<compile_context>
chip_gen: v7x
topology: tpu7x:2x2x1
jax: 0.10.0
libtpu: 0.0.40
codegen_flags: <defaults>
</compile_context>

<pallas_src>
import math
import functools

import jax
import jax.numpy as jnp
from jax.experimental import pallas as pl
from jax.experimental.pallas import tpu as pltpu


# ----------------------------- small math helpers ---------------------------

def _layernorm(x, g, b, eps=1e-5):
    mu = jnp.mean(x, axis=-1, keepdims=True)
    xc = x - mu
    var = jnp.mean(xc * xc, axis=-1, keepdims=True)
    return xc * jax.lax.rsqrt(var + eps) * g + b


def _gelu_exact(x):
    # PyTorch nn.GELU() default = exact erf formulation.
    return 0.5 * x * (1.0 + jax.lax.erf(x * (1.0 / math.sqrt(2.0))))


# --------------------------------- kernel -----------------------------------

def perceiver_kernel(
    media_ref, lat0_ref,
    nm_g_ref, nm_b_ref, nl_g_ref, nl_b_ref,
    wq_ref, wkv_ref, wo_ref,
    ffg_ref, ffb_ref, w1_ref, w2_ref,
    fin_g_ref, fin_b_ref,
    out_ref,
    kv_scratch, o_scratch,
    *, heads, dim_head, depth, tb, n, n_l,
):
    l = pl.program_id(1)
    D = media_ref.shape[-1]
    S = n + n_l
    hd = heads * dim_head
    scale = math.sqrt(dim_head)
    f32 = jnp.float32
    bf16 = jnp.bfloat16

    # Layer 0: initialize the carried latents from the learned latents.
    @pl.when(l == 0)
    def _():
        out_ref[...] = jnp.broadcast_to(lat0_ref[...][None], (tb, n_l, D))

    latents = out_ref[...]                              # (TB, n_l, D) f32
    media = media_ref[...]                              # (TB, n,   D) f32

    # ---- PerceiverAttention ----
    media_n = _layernorm(media, nm_g_ref[...], nm_b_ref[...])
    lat_n = _layernorm(latents, nl_g_ref[...], nl_b_ref[...])

    # Stage [norm(media); norm(latents)] into a VMEM scratch (no concat copy).
    kv_scratch[:, :n, :] = media_n
    kv_scratch[:, n:, :] = lat_n

    lat_2d = lat_n.astype(bf16).reshape(tb * n_l, D)
    kv_2d = kv_scratch[...].astype(bf16).reshape(tb * S, D)

    # Fused projections: bf16 x bf16 -> f32 accumulation, large M on the MXU.
    q = jnp.dot(lat_2d, wq_ref[...], preferred_element_type=f32)    # (TB*n_l, hd)
    kv = jnp.dot(kv_2d, wkv_ref[...], preferred_element_type=f32)   # (TB*S, 2hd)

    q_b = q.astype(bf16).reshape(tb, n_l, hd)
    kv_b = kv.astype(bf16).reshape(tb, S, 2 * hd)

    # Per-head attention, batched over the tile: bf16 operands, f32 accum.
    # Each head's PV result lands in its lane range of o_scratch, producing the
    # heads-concatenated layout for one big output-projection matmul.
    for h in range(heads):
        lo = h * dim_head
        q_h = q_b[:, :, lo:lo + dim_head]               # (TB, n_l, dh)
        k_h = kv_b[:, :, lo:lo + dim_head]              # (TB, S,   dh)
        v_h = kv_b[:, :, hd + lo:hd + lo + dim_head]    # (TB, S,   dh)
        s = jnp.einsum('bqd,bkd->bqk', q_h, k_h, preferred_element_type=f32)
        s = s - jnp.max(s, axis=-1, keepdims=True)
        e = jnp.exp(s)
        # softmax(s) / sqrt(dim_head): scale folded into one (EUP) reciprocal.
        p = e * pl.reciprocal(jnp.sum(e, axis=-1, keepdims=True) * scale,
                              approx=True)
        pv = jnp.einsum('bqk,bkd->bqd', p.astype(bf16), v_h,
                        preferred_element_type=f32)     # (TB, n_l, dh)
        o_scratch[:, :, lo:lo + dim_head] = pv

    # Single output projection over the heads-concatenated layout.
    o_cat = o_scratch[...].astype(bf16).reshape(tb * n_l, hd)
    attn_out = jnp.dot(o_cat, wo_ref[...], preferred_element_type=f32)
    latents = latents + attn_out.reshape(tb, n_l, D)     # attention residual

    # ---- FeedForward ----
    x = _layernorm(latents, ffg_ref[...], ffb_ref[...])
    x2 = x.astype(bf16).reshape(tb * n_l, D)
    h1 = jnp.dot(x2, w1_ref[...], preferred_element_type=f32)
    h1 = _gelu_exact(h1)
    ff = jnp.dot(h1.astype(bf16), w2_ref[...], preferred_element_type=f32)
    latents = latents + ff.reshape(tb, n_l, D)           # FF residual

    # ---- write carried state; final LayerNorm only on the last layer ----
    @pl.when(l == depth - 1)
    def _():
        out_ref[...] = _layernorm(
            latents, fin_g_ref[...], fin_b_ref[...]).astype(out_ref.dtype)

    @pl.when(l < depth - 1)
    def _():
        out_ref[...] = latents.astype(out_ref.dtype)


# --------------------------------- wrapper ----------------------------------

def perceiver_sampler(media, params, *, heads, dim_head, depth, num_latents,
                      tile_bt=None):
    B, T = media.shape[:2]
    D = media.shape[-1]
    media_flat = media.reshape(B * T, -1, D)
    BT, n, _ = media_flat.shape
    n_l = num_latents
    hd = heads * dim_head
    inner = params["w1"].shape[-1]
    S = n + n_l

    if tile_bt is None:
        tile_bt = next(c for c in (8, 4, 2, 1) if BT % c == 0)
    assert BT % tile_bt == 0, "BT must be divisible by tile_bt"
    num_tiles = BT // tile_bt

    # bf16 weights (half the HBM weight traffic); f32 accumulation in-kernel.
    bf16 = jnp.bfloat16
    wq_b = params["wq"].astype(bf16)                       # (depth, D, hd)
    wkv_b = params["wkv"].astype(bf16)                     # (depth, D, 2hd)
    wo_b = params["wo"].astype(bf16)                       # (depth, hd, D)
    w1_b = params["w1"].astype(bf16)                       # (depth, D, inner)
    w2_b = params["w2"].astype(bf16)                       # (depth, inner, D)

    kernel = functools.partial(
        perceiver_kernel, heads=heads, dim_head=dim_head, depth=depth,
        tb=tile_bt, n=n, n_l=n_l)

    def wspec(shape):   # depth-stacked weight (depth, *shape): pick layer l
        nd = len(shape)
        return pl.BlockSpec((None,) + shape,
                            lambda i, l, nd=nd: (l,) + (0,) * nd)

    def cspec(shape):   # constant (un-stacked) array, full block
        nd = len(shape)
        return pl.BlockSpec(shape, lambda i, l, nd=nd: (0,) * nd)

    out = pl.pallas_call(
        kernel,
        out_shape=jax.ShapeDtypeStruct((BT, n_l, D), jnp.float32),
        grid=(num_tiles, depth),
        in_specs=[
            pl.BlockSpec((tile_bt, n, D), lambda i, l: (i, 0, 0)),  # media tile
            cspec((n_l, D)),                                        # learned latents
            wspec((1, D)), wspec((1, D)),                           # norm_media g/b
            wspec((1, D)), wspec((1, D)),                           # norm_latents g/b
            wspec((D, hd)), wspec((D, 2 * hd)),                     # Wq, Wkv (fused)
            wspec((hd, D)),                                         # Wo
            wspec((1, D)), wspec((1, D)),                           # FF LayerNorm g/b
            wspec((D, inner)), wspec((inner, D)),                   # FF W1, W2
            cspec((1, D)), cspec((1, D)),                           # final norm g/b
        ],
        out_specs=pl.BlockSpec((tile_bt, n_l, D), lambda i, l: (i, 0, 0)),
        scratch_shapes=[pltpu.VMEM((tile_bt, S, D), jnp.float32),
                        pltpu.VMEM((tile_bt, n_l, hd), jnp.float32)],
        compiler_params=pltpu.CompilerParams(
            dimension_semantics=("parallel", "arbitrary"),
            vmem_limit_bytes=64 * 1024 * 1024),
    )(media_flat, params["latents"],
      params["nm_g"], params["nm_b"], params["nl_g"], params["nl_b"],
      wq_b, wkv_b, wo_b,
      params["ff_g"], params["ff_b"], w1_b, w2_b,
      params["fin_g"], params["fin_b"])

    return out.reshape(B, T, n_l, D)


# ------------------------- pure-JAX reference (check) ------------------------
# Mirrors the kernel's mixed precision: bf16 weights and bf16 operands for all
# matmuls (projections, scores, PV, output projection, FF) with f32
# accumulation; LayerNorms / softmax stats in f32.  The only remaining
# kernel-vs-reference deltas are the approximate reciprocal and accumulation
# order.

def reference(media, params, *, heads, dim_head, depth, num_latents):
    f32, bf16 = jnp.float32, jnp.bfloat16
    B, T = media.shape[:2]
    D = media.shape[-1]
    hd = heads * dim_head
    scale = math.sqrt(dim_head)
    media_f = media.reshape(B, T, -1, D)
    lat = jnp.broadcast_to(params["latents"][None, None],
                           (B, T, num_latents, D))

    wq = params["wq"].astype(bf16)
    wkv = params["wkv"].astype(bf16)
    wk, wv = wkv[..., :hd], wkv[..., hd:]
    wo = params["wo"].astype(bf16)
    w1 = params["w1"].astype(bf16)
    w2 = params["w2"].astype(bf16)

    def proj(x, w):
        return jnp.einsum('btsd,dh->btsh', x.astype(bf16), w,
                          preferred_element_type=f32)

    def split_heads(x):  # (B,T,s,hd) -> (B,T,heads,s,dh)
        return x.reshape(*x.shape[:-1], heads, dim_head).transpose(0, 1, 3, 2, 4)

    for l in range(depth):
        m_n = _layernorm(media_f, params["nm_g"][l, 0], params["nm_b"][l, 0])
        l_n = _layernorm(lat, params["nl_g"][l, 0], params["nl_b"][l, 0])
        kv_in = jnp.concatenate([m_n, l_n], axis=-2)
        q = split_heads(proj(l_n, wq[l]).astype(bf16))
        k = split_heads(proj(kv_in, wk[l]).astype(bf16))
        v = split_heads(proj(kv_in, wv[l]).astype(bf16))
        s = jnp.einsum('bthqd,bthkd->bthqk', q, k, preferred_element_type=f32)
        s = s - jnp.max(s, axis=-1, keepdims=True)
        e = jnp.exp(s)
        p = e / (jnp.sum(e, axis=-1, keepdims=True) * scale)   # softmax / sqrt(dh)
        o = jnp.einsum('bthqk,bthkd->bthqd', p.astype(bf16), v,
                       preferred_element_type=f32)
        o = o.transpose(0, 1, 3, 2, 4).reshape(B, T, num_latents, hd)
        o = jnp.einsum('btsh,hd->btsd', o.astype(bf16), wo[l],
                       preferred_element_type=f32)
        lat = lat + o
        x = _layernorm(lat, params["ff_g"][l, 0], params["ff_b"][l, 0])
        h1 = _gelu_exact(jnp.einsum('btsd,di->btsi', x.astype(bf16), w1[l],
                                    preferred_element_type=f32))
        ff = jnp.einsum('btsi,id->btsd', h1.astype(bf16), w2[l],
                        preferred_element_type=f32)
        lat = lat + ff
    return _layernorm(lat, params["fin_g"][0], params["fin_b"][0])


# ------------------------------ params & main --------------------------------

def init_params(key, *, dim, depth, dim_head, heads, num_latents, ff_mult):
    hd = dim_head * heads
    inner = dim * ff_mult
    ks = jax.random.split(key, 6)

    def nrm(k, shape, s=0.05):
        return jax.random.normal(k, shape, jnp.float32) * s

    return dict(
        latents=jax.random.normal(ks[0], (num_latents, dim), jnp.float32),
        nm_g=jnp.ones((depth, 1, dim), jnp.float32),
        nm_b=jnp.zeros((depth, 1, dim), jnp.float32),
        nl_g=jnp.ones((depth, 1, dim), jnp.float32),
        nl_b=jnp.zeros((depth, 1, dim), jnp.float32),
        wq=nrm(ks[1], (depth, dim, hd)),
        wkv=nrm(ks[2], (depth, dim, 2 * hd)),
        wo=nrm(ks[3], (depth, hd, dim)),
        ff_g=jnp.ones((depth, 1, dim), jnp.float32),
        ff_b=jnp.zeros((depth, 1, dim), jnp.float32),
        w1=nrm(ks[4], (depth, dim, inner)),
        w2=nrm(ks[5], (depth, inner, dim)),
        fin_g=jnp.ones((1, dim), jnp.float32),
        fin_b=jnp.zeros((1, dim), jnp.float32),
    )


if __name__ == "__main__":
    B, T, F_, v = 2, 2, 1, 8           # media: B x T x F x v x D
    dim, depth, dim_head, heads = 32, 2, 8, 4
    num_latents, ff_mult = 8, 4

    key = jax.random.PRNGKey(0)
    kp, km = jax.random.split(key)
    params = init_params(kp, dim=dim, depth=depth, dim_head=dim_head,
                         heads=heads, num_latents=num_latents, ff_mult=ff_mult)
    media = jax.random.normal(km, (B, T, F_, v, dim), jnp.float32)

    out = perceiver_sampler(media, params, heads=heads, dim_head=dim_head,
                            depth=depth, num_latents=num_latents, tile_bt=2)
    out = jax.block_until_ready(out)

    ref = reference(media, params, heads=heads, dim_head=dim_head,
                    depth=depth, num_latents=num_latents)
    assert out.shape == (B, T, num_latents, dim)
    err = float(jnp.max(jnp.abs(out - ref)))
    # Tolerance covers the approximate (EUP) reciprocal in the fused softmax
    # normalizer; everything else matches the mixed-precision reference.
    assert jnp.allclose(out, ref, atol=2e-2, rtol=2e-2), err
    print("KERNEL_OK")
</pallas_src>

<mosaic_0001>
module attributes {stable_mosaic.version = 11 : i64} {
  func.func @perceiver_kernel(%arg0: i32, %arg1: i32, %arg2: memref<2x8x32xf32, #tpu.memory_space<vmem>>, %arg3: memref<8x32xf32, #tpu.memory_space<vmem>>, %arg4: memref<1x1x32xf32, #tpu.memory_space<vmem>>, %arg5: memref<1x1x32xf32, #tpu.memory_space<vmem>>, %arg6: memref<1x1x32xf32, #tpu.memory_space<vmem>>, %arg7: memref<1x1x32xf32, #tpu.memory_space<vmem>>, %arg8: memref<1x32x32xbf16, #tpu.memory_space<vmem>>, %arg9: memref<1x32x64xbf16, #tpu.memory_space<vmem>>, %arg10: memref<1x32x32xbf16, #tpu.memory_space<vmem>>, %arg11: memref<1x1x32xf32, #tpu.memory_space<vmem>>, %arg12: memref<1x1x32xf32, #tpu.memory_space<vmem>>, %arg13: memref<1x32x128xbf16, #tpu.memory_space<vmem>>, %arg14: memref<1x128x32xbf16, #tpu.memory_space<vmem>>, %arg15: memref<1x32xf32, #tpu.memory_space<vmem>>, %arg16: memref<1x32xf32, #tpu.memory_space<vmem>>, %arg17: memref<2x8x32xf32, #tpu.memory_space<vmem>>, %arg18: memref<2x16x32xf32, #tpu.memory_space<vmem>>, %arg19: memref<2x8x32xf32, #tpu.memory_space<vmem>>) attributes {dimension_semantics = [#tpu.dimension_semantics<parallel>, #tpu.dimension_semantics<arbitrary>], iteration_bounds = array<i64: 2, 2>, scalar_prefetch = 0 : i64, scratch_operands = 2 : i64, tpu.core_type = #tpu.core_type<tc>, window_params = [{transform_indices = @transform_0, window_bounds = array<i64: 2, 8, 32>}, {pipeline_mode = #tpu.pipeline_mode<synchronous>, transform_indices = @transform_1, window_bounds = array<i64: 8, 32>}, {transform_indices = @transform_2, window_bounds = array<i64: 1, 1, 32>}, {transform_indices = @transform_3, window_bounds = array<i64: 1, 1, 32>}, {transform_indices = @transform_4, window_bounds = array<i64: 1, 1, 32>}, {transform_indices = @transform_5, window_bounds = array<i64: 1, 1, 32>}, {transform_indices = @transform_6, window_bounds = array<i64: 1, 32, 32>}, {transform_indices = @transform_7, window_bounds = array<i64: 1, 32, 64>}, {transform_indices = @transform_8, window_bounds = array<i64: 1, 32, 32>}, {transform_indices = @transform_9, window_bounds = array<i64: 1, 1, 32>}, {transform_indices = @transform_10, window_bounds = array<i64: 1, 1, 32>}, {transform_indices = @transform_11, window_bounds = array<i64: 1, 32, 128>}, {transform_indices = @transform_12, window_bounds = array<i64: 1, 128, 32>}, {pipeline_mode = #tpu.pipeline_mode<synchronous>, transform_indices = @transform_13, window_bounds = array<i64: 1, 32>}, {pipeline_mode = #tpu.pipeline_mode<synchronous>, transform_indices = @transform_14, window_bounds = array<i64: 1, 32>}, {transform_indices = @transform_15, window_bounds = array<i64: 2, 8, 32>}]} {
    %c0_i32 = arith.constant 0 : i32
    %0 = arith.cmpi eq, %arg1, %c0_i32 : i32
    %1 = arith.extui %0 : i1 to i32
    %c0_i32_0 = arith.constant 0 : i32
    %2 = arith.cmpi ne, %1, %c0_i32_0 : i32
    scf.if %2 {
      %c0_105 = arith.constant 0 : index
      %c0_106 = arith.constant 0 : index
      %209 = vector.load %arg3[%c0_105, %c0_106] : memref<8x32xf32, #tpu.memory_space<vmem>>, vector<8x32xf32>
      %210 = vector.shape_cast %209 : vector<8x32xf32> to vector<1x8x32xf32>
      %211 = vector.shape_cast %210 : vector<1x8x32xf32> to vector<1x8x32xf32>
      %212 = vector.broadcast %211 : vector<1x8x32xf32> to vector<2x8x32xf32>
      %c0_107 = arith.constant 0 : index
      %c0_108 = arith.constant 0 : index
      %c0_109 = arith.constant 0 : index
      %213 = vector.load %arg17[%c0_107, %c0_108, %c0_109] : memref<2x8x32xf32, #tpu.memory_space<vmem>>, vector<2x8x32xf32>
      tpu.vector_store %arg17[%c0_107, %c0_108, %c0_109], %212 {strides = array<i32>} : memref<2x8x32xf32, #tpu.memory_space<vmem>>, vector<2x8x32xf32>,
    } else {
    }
    %c0 = arith.constant 0 : index
    %c0_1 = arith.constant 0 : index
    %c0_2 = arith.constant 0 : index
    %3 = vector.load %arg17[%c0, %c0_1, %c0_2] : memref<2x8x32xf32, #tpu.memory_space<vmem>>, vector<2x8x32xf32>
    %c0_3 = arith.constant 0 : index
    %c0_4 = arith.constant 0 : index
    %c0_5 = arith.constant 0 : index
    %4 = vector.load %arg2[%c0_3, %c0_4, %c0_5] : memref<2x8x32xf32, #tpu.memory_space<vmem>>, vector<2x8x32xf32>
    %c0_6 = arith.constant 0 : index
    %c0_7 = arith.constant 0 : index
    %c0_8 = arith.constant 0 : index
    %5 = vector.load %arg4[%c0_6, %c0_7, %c0_8] : memref<1x1x32xf32, #tpu.memory_space<vmem>>, vector<1x1x32xf32>
    %6 = vector.shape_cast %5 : vector<1x1x32xf32> to vector<1x32xf32>
    %c0_9 = arith.constant 0 : index
    %c0_10 = arith.constant 0 : index
    %c0_11 = arith.constant 0 : index
    %7 = vector.load %arg5[%c0_9, %c0_10, %c0_11] : memref<1x1x32xf32, #tpu.memory_space<vmem>>, vector<1x1x32xf32>
    %8 = vector.shape_cast %7 : vector<1x1x32xf32> to vector<1x32xf32>
    %cst = arith.constant dense<0.000000e+00> : vector<2x8xf32>
    %9 = vector.multi_reduction <add>, %4, %cst [2] : vector<2x8x32xf32> to vector<2x8xf32>
    %10 = vector.shape_cast %9 : vector<2x8xf32> to vector<2x8x1xf32>
    %cst_12 = arith.constant 3.200000e+01 : f32
    %11 = vector.broadcast %cst_12 : f32 to vector<2x8x1xf32>
    %12 = arith.divf %10, %11 : vector<2x8x1xf32>
    %13 = vector.broadcast %12 : vector<2x8x1xf32> to vector<2x8x32xf32>
    %14 = arith.subf %4, %13 : vector<2x8x32xf32>
    %15 = arith.mulf %14, %14 : vector<2x8x32xf32>
    %cst_13 = arith.constant dense<0.000000e+00> : vector<2x8xf32>
    %16 = vector.multi_reduction <add>, %15, %cst_13 [2] : vector<2x8x32xf32> to vector<2x8xf32>
    %17 = vector.shape_cast %16 : vector<2x8xf32> to vector<2x8x1xf32>
    %cst_14 = arith.constant 3.200000e+01 : f32
    %18 = vector.broadcast %cst_14 : f32 to vector<2x8x1xf32>
    %19 = arith.divf %17, %18 : vector<2x8x1xf32>
    %cst_15 = arith.constant 9.99999974E-6 : f32
    %20 = vector.broadcast %cst_15 : f32 to vector<2x8x1xf32>
    %21 = arith.addf %19, %20 : vector<2x8x1xf32>
    %22 = math.rsqrt %21 : vector<2x8x1xf32>
    %23 = vector.broadcast %22 : vector<2x8x1xf32> to vector<2x8x32xf32>
    %24 = arith.mulf %14, %23 : vector<2x8x32xf32>
    %25 = vector.shape_cast %6 : vector<1x32xf32> to vector<1x1x32xf32>
    %26 = vector.broadcast %25 : vector<1x1x32xf32> to vector<2x8x32xf32>
    %27 = arith.mulf %24, %26 : vector<2x8x32xf32>
    %28 = vector.shape_cast %8 : vector<1x32xf32> to vector<1x1x32xf32>
    %29 = vector.broadcast %28 : vector<1x1x32xf32> to vector<2x8x32xf32>
    %30 = arith.addf %27, %29 : vector<2x8x32xf32>
    %c0_16 = arith.constant 0 : index
    %c0_17 = arith.constant 0 : index
    %c0_18 = arith.constant 0 : index
    %31 = vector.load %arg6[%c0_16, %c0_17, %c0_18] : memref<1x1x32xf32, #tpu.memory_space<vmem>>, vector<1x1x32xf32>
    %32 = vector.shape_cast %31 : vector<1x1x32xf32> to vector<1x32xf32>
    %c0_19 = arith.constant 0 : index
    %c0_20 = arith.constant 0 : index
    %c0_21 = arith.constant 0 : index
    %33 = vector.load %arg7[%c0_19, %c0_20, %c0_21] : memref<1x1x32xf32, #tpu.memory_space<vmem>>, vector<1x1x32xf32>
    %34 = vector.shape_cast %33 : vector<1x1x32xf32> to vector<1x32xf32>
    %cst_22 = arith.constant dense<0.000000e+00> : vector<2x8xf32>
    %35 = vector.multi_reduction <add>, %3, %cst_22 [2] : vector<2x8x32xf32> to vector<2x8xf32>
    %36 = vector.shape_cast %35 : vector<2x8xf32> to vector<2x8x1xf32>
    %cst_23 = arith.constant 3.200000e+01 : f32
    %37 = vector.broadcast %cst_23 : f32 to vector<2x8x1xf32>
    %38 = arith.divf %36, %37 : vector<2x8x1xf32>
    %39 = vector.broadcast %38 : vector<2x8x1xf32> to vector<2x8x32xf32>
    %40 = arith.subf %3, %39 : vector<2x8x32xf32>
    %41 = arith.mulf %40, %40 : vector<2x8x32xf32>
    %cst_24 = arith.constant dense<0.000000e+00> : vector<2x8xf32>
    %42 = vector.multi_reduction <add>, %41, %cst_24 [2] : vector<2x8x32xf32> to vector<2x8xf32>
    %43 = vector.shape_cast %42 : vector<2x8xf32> to vector<2x8x1xf32>
    %cst_25 = arith.constant 3.200000e+01 : f32
    %44 = vector.broadcast %cst_25 : f32 to vector<2x8x1xf32>
    %45 = arith.divf %43, %44 : vector<2x8x1xf32>
    %cst_26 = arith.constant 9.99999974E-6 : f32
    %46 = vector.broadcast %cst_26 : f32 to vector<2x8x1xf32>
    %47 = arith.addf %45, %46 : vector<2x8x1xf32>
    %48 = math.rsqrt %47 : vector<2x8x1xf32>
    %49 = vector.broadcast %48 : vector<2x8x1xf32> to vector<2x8x32xf32>
    %50 = arith.mulf %40, %49 : vector<2x8x32xf32>
    %51 = vector.shape_cast %32 : vector<1x32xf32> to vector<1x1x32xf32>
    %52 = vector.broadcast %51 : vector<1x1x32xf32> to vector<2x8x32xf32>
    %53 = arith.mulf %50, %52 : vector<2x8x32xf32>
    %54 = vector.shape_cast %34 : vector<1x32xf32> to vector<1x1x32xf32>
    %55 = vector.broadcast %54 : vector<1x1x32xf32> to vector<2x8x32xf32>
    %56 = arith.addf %53, %55 : vector<2x8x32xf32>
    %c0_27 = arith.constant 0 : index
    %c0_28 = arith.constant 0 : index
    %c0_29 = arith.constant 0 : index
    %57 = vector.load %arg18[%c0_27, %c0_28, %c0_29] : memref<2x16x32xf32, #tpu.memory_space<vmem>>, vector<2x8x32xf32>
    tpu.vector_store %arg18[%c0_27, %c0_28, %c0_29], %30 {strides = array<i32>} : memref<2x16x32xf32, #tpu.memory_space<vmem>>, vector<2x8x32xf32>,
    %c0_30 = arith.constant 0 : index
    %c8 = arith.constant 8 : index
    %c0_31 = arith.constant 0 : index
    %58 = vector.load %arg18[%c0_30, %c8, %c0_31] : memref<2x16x32xf32, #tpu.memory_space<vmem>>, vector<2x8x32xf32>
    tpu.vector_store %arg18[%c0_30, %c8, %c0_31], %56 {strides = array<i32>} : memref<2x16x32xf32, #tpu.memory_space<vmem>>, vector<2x8x32xf32>,
    %59 = arith.truncf %56 : vector<2x8x32xf32> to vector<2x8x32xbf16>
    %60 = vector.shape_cast %59 : vector<2x8x32xbf16> to vector<16x32xbf16>
    %c0_32 = arith.constant 0 : index
    %c0_33 = arith.constant 0 : index
    %c0_34 = arith.constant 0 : index
    %61 = vector.load %arg18[%c0_32, %c0_33, %c0_34] : memref<2x16x32xf32, #tpu.memory_space<vmem>>, vector<2x16x32xf32>
    %62 = arith.truncf %61 : vector<2x16x32xf32> to vector<2x16x32xbf16>
    %63 = vector.shape_cast %62 : vector<2x16x32xbf16> to vector<32x32xbf16>
    %c0_35 = arith.constant 0 : index
    %c0_36 = arith.constant 0 : index
    %c0_37 = arith.constant 0 : index
    %64 = vector.load %arg8[%c0_35, %c0_36, %c0_37] : memref<1x32x32xbf16, #tpu.memory_space<vmem>>, vector<1x32x32xbf16>
    %65 = vector.shape_cast %64 : vector<1x32x32xbf16> to vector<32x32xbf16>
    %cst_38 = arith.constant dense<0.000000e+00> : vector<16x32xf32>
    %66 = tpu.matmul %60, %65, %cst_38 {dimension_numbers = #tpu.dot_dimension_numbers<[1], [0], [0], [1], [0, 0, 1, 1], [], []>} : vector<16x32xbf16>, vector<32x32xbf16>, vector<16x32xf32> -> vector<16x32xf32>
    %c0_39 = arith.constant 0 : index
    %c0_40 = arith.constant 0 : index
    %c0_41 = arith.constant 0 : index
    %67 = vector.load %arg9[%c0_39, %c0_40, %c0_41] : memref<1x32x64xbf16, #tpu.memory_space<vmem>>, vector<1x32x64xbf16>
    %68 = vector.shape_cast %67 : vector<1x32x64xbf16> to vector<32x64xbf16>
    %cst_42 = arith.constant dense<0.000000e+00> : vector<32x64xf32>
    %69 = tpu.matmul %63, %68, %cst_42 {dimension_numbers = #tpu.dot_dimension_numbers<[1], [0], [0], [1], [0, 0, 1, 1], [], []>} : vector<32x32xbf16>, vector<32x64xbf16>, vector<32x64xf32> -> vector<32x64xf32>
    %70 = arith.truncf %66 : vector<16x32xf32> to vector<16x32xbf16>
    %71 = vector.shape_cast %70 : vector<16x32xbf16> to vector<2x8x32xbf16>
    %72 = arith.truncf %69 : vector<32x64xf32> to vector<32x64xbf16>
    %73 = vector.shape_cast %72 : vector<32x64xbf16> to vector<2x16x64xbf16>
    %74 = vector.extract_strided_slice %71 {offsets = [0, 0, 0], sizes = [2, 8, 8], strides = [1, 1, 1]} : vector<2x8x32xbf16> to vector<2x8x8xbf16>
    %75 = vector.extract_strided_slice %73 {offsets = [0, 0, 0], sizes = [2, 16, 8], strides = [1, 1, 1]} : vector<2x16x64xbf16> to vector<2x16x8xbf16>
    %76 = vector.extract_strided_slice %73 {offsets = [0, 0, 32], sizes = [2, 16, 8], strides = [1, 1, 1]} : vector<2x16x64xbf16> to vector<2x16x8xbf16>
    "tpu.trace_start"() <{level = 10 : i32, message = "bqd,bkd->bqk"}> : () -> ()
    %cst_43 = arith.constant dense<0.000000e+00> : vector<2x8x16xf32>
    %77 = tpu.matmul %74, %75, %cst_43 {dimension_numbers = #tpu.dot_dimension_numbers<[2], [2], [1], [1], [0, 0, 0, 1, 1, 1], [0], [0]>} : vector<2x8x8xbf16>, vector<2x16x8xbf16>, vector<2x8x16xf32> -> vector<2x8x16xf32>
    "tpu.trace_stop"() : () -> ()
    %cst_44 = arith.constant dense<0xFF800000> : vector<2x8xf32>
    %78 = vector.multi_reduction <maximumf>, %77, %cst_44 [2] : vector<2x8x16xf32> to vector<2x8xf32>
    %79 = vector.shape_cast %78 : vector<2x8xf32> to vector<2x8x1xf32>
    %80 = vector.broadcast %79 : vector<2x8x1xf32> to vector<2x8x16xf32>
    %81 = arith.subf %77, %80 : vector<2x8x16xf32>
    %82 = math.exp %81 : vector<2x8x16xf32>
    %cst_45 = arith.constant dense<0.000000e+00> : vector<2x8xf32>
    %83 = vector.multi_reduction <add>, %82, %cst_45 [2] : vector<2x8x16xf32> to vector<2x8xf32>
    %84 = vector.shape_cast %83 : vector<2x8xf32> to vector<2x8x1xf32>
    %cst_46 = arith.constant 2.82842708 : f32
    %85 = vector.broadcast %cst_46 : f32 to vector<2x8x1xf32>
    %86 = arith.mulf %84, %85 : vector<2x8x1xf32>
    %87 = tpu.reciprocal %86 {approx = true} : vector<2x8x1xf32> -> vector<2x8x1xf32>
    %88 = vector.broadcast %87 : vector<2x8x1xf32> to vector<2x8x16xf32>
    %89 = arith.mulf %82, %88 : vector<2x8x16xf32>
    %90 = arith.truncf %89 : vector<2x8x16xf32> to vector<2x8x16xbf16>
    "tpu.trace_start"() <{level = 10 : i32, message = "bqk,bkd->bqd"}> : () -> ()
    %cst_47 = arith.constant dense<0.000000e+00> : vector<2x8x8xf32>
    %91 = tpu.matmul %90, %76, %cst_47 {dimension_numbers = #tpu.dot_dimension_numbers<[2], [1], [1], [2], [0, 0, 0, 1, 1, 2], [0], [0]>} : vector<2x8x16xbf16>, vector<2x16x8xbf16>, vector<2x8x8xf32> -> vector<2x8x8xf32>
    "tpu.trace_stop"() : () -> ()
    %c0_48 = arith.constant 0 : index
    %c0_49 = arith.constant 0 : index
    %c0_50 = arith.constant 0 : index
    %92 = vector.load %arg19[%c0_48, %c0_49, %c0_50] : memref<2x8x32xf32, #tpu.memory_space<vmem>>, vector<2x8x8xf32>
    tpu.vector_store %arg19[%c0_48, %c0_49, %c0_50], %91 {strides = array<i32>} : memref<2x8x32xf32, #tpu.memory_space<vmem>>, vector<2x8x8xf32>,
    %93 = vector.extract_strided_slice %71 {offsets = [0, 0, 8], sizes = [2, 8, 8], strides = [1, 1, 1]} : vector<2x8x32xbf16> to vector<2x8x8xbf16>
    %94 = vector.extract_strided_slice %73 {offsets = [0, 0, 8], sizes = [2, 16, 8], strides = [1, 1, 1]} : vector<2x16x64xbf16> to vector<2x16x8xbf16>
    %95 = vector.extract_strided_slice %73 {offsets = [0, 0, 40], sizes = [2, 16, 8], strides = [1, 1, 1]} : vector<2x16x64xbf16> to vector<2x16x8xbf16>
    "tpu.trace_start"() <{level = 10 : i32, message = "bqd,bkd->bqk"}> : () -> ()
    %cst_51 = arith.constant dense<0.000000e+00> : vector<2x8x16xf32>
    %96 = tpu.matmul %93, %94, %cst_51 {dimension_numbers = #tpu.dot_dimension_numbers<[2], [2], [1], [1], [0, 0, 0, 1, 1, 1], [0], [0]>} : vector<2x8x8xbf16>, vector<2x16x8xbf16>, vector<2x8x16xf32> -> vector<2x8x16xf32>
    "tpu.trace_stop"() : () -> ()
    %cst_52 = arith.constant dense<0xFF800000> : vector<2x8xf32>
    %97 = vector.multi_reduction <maximumf>, %96, %cst_52 [2] : vector<2x8x16xf32> to vector<2x8xf32>
    %98 = vector.shape_cast %97 : vector<2x8xf32> to vector<2x8x1xf32>
    %99 = vector.broadcast %98 : vector<2x8x1xf32> to vector<2x8x16xf32>
    %100 = arith.subf %96, %99 : vector<2x8x16xf32>
    %101 = math.exp %100 : vector<2x8x16xf32>
    %cst_53 = arith.constant dense<0.000000e+00> : vector<2x8xf32>
    %102 = vector.multi_reduction <add>, %101, %cst_53 [2] : vector<2x8x16xf32> to vector<2x8xf32>
    %103 = vector.shape_cast %102 : vector<2x8xf32> to vector<2x8x1xf32>
    %cst_54 = arith.constant 2.82842708 : f32
    %104 = vector.broadcast %cst_54 : f32 to vector<2x8x1xf32>
    %105 = arith.mulf %103, %104 : vector<2x8x1xf32>
    %106 = tpu.reciprocal %105 {approx = true} : vector<2x8x1xf32> -> vector<2x8x1xf32>
    %107 = vector.broadcast %106 : vector<2x8x1xf32> to vector<2x8x16xf32>
    %108 = arith.mulf %101, %107 : vector<2x8x16xf32>
    %109 = arith.truncf %108 : vector<2x8x16xf32> to vector<2x8x16xbf16>
    "tpu.trace_start"() <{level = 10 : i32, message = "bqk,bkd->bqd"}> : () -> ()
    %cst_55 = arith.constant dense<0.000000e+00> : vector<2x8x8xf32>
    %110 = tpu.matmul %109, %95, %cst_55 {dimension_numbers = #tpu.dot_dimension_numbers<[2], [1], [1], [2], [0, 0, 0, 1, 1, 2], [0], [0]>} : vector<2x8x16xbf16>, vector<2x16x8xbf16>, vector<2x8x8xf32> -> vector<2x8x8xf32>
    "tpu.trace_stop"() : () -> ()
    %c0_56 = arith.constant 0 : index
    %c0_57 = arith.constant 0 : index
    %c8_58 = arith.constant 8 : index
    %111 = vector.load %arg19[%c0_56, %c0_57, %c8_58] : memref<2x8x32xf32, #tpu.memory_space<vmem>>, vector<2x8x8xf32>
    tpu.vector_store %arg19[%c0_56, %c0_57, %c8_58], %110 {strides = array<i32>} : memref<2x8x32xf32, #tpu.memory_space<vmem>>, vector<2x8x8xf32>,
    %112 = vector.extract_strided_slice %71 {offsets = [0, 0, 16], sizes = [2, 8, 8], strides = [1, 1, 1]} : vector<2x8x32xbf16> to vector<2x8x8xbf16>
    %113 = vector.extract_strided_slice %73 {offsets = [0, 0, 16], sizes = [2, 16, 8], strides = [1, 1, 1]} : vector<2x16x64xbf16> to vector<2x16x8xbf16>
    %114 = vector.extract_strided_slice %73 {offsets = [0, 0, 48], sizes = [2, 16, 8], strides = [1, 1, 1]} : vector<2x16x64xbf16> to vector<2x16x8xbf16>
    "tpu.trace_start"() <{level = 10 : i32, message = "bqd,bkd->bqk"}> : () -> ()
    %cst_59 = arith.constant dense<0.000000e+00> : vector<2x8x16xf32>
    %115 = tpu.matmul %112, %113, %cst_59 {dimension_numbers = #tpu.dot_dimension_numbers<[2], [2], [1], [1], [0, 0, 0, 1, 1, 1], [0], [0]>} : vector<2x8x8xbf16>, vector<2x16x8xbf16>, vector<2x8x16xf32> -> vector<2x8x16xf32>
    "tpu.trace_stop"() : () -> ()
    %cst_60 = arith.constant dense<0xFF800000> : vector<2x8xf32>
    %116 = vector.multi_reduction <maximumf>, %115, %cst_60 [2] : vector<2x8x16xf32> to vector<2x8xf32>
    %117 = vector.shape_cast %116 : vector<2x8xf32> to vector<2x8x1xf32>
    %118 = vector.broadcast %117 : vector<2x8x1xf32> to vector<2x8x16xf32>
    %119 = arith.subf %115, %118 : vector<2x8x16xf32>
    %120 = math.exp %119 : vector<2x8x16xf32>
    %cst_61 = arith.constant dense<0.000000e+00> : vector<2x8xf32>
    %121 = vector.multi_reduction <add>, %120, %cst_61 [2] : vector<2x8x16xf32> to vector<2x8xf32>
    %122 = vector.shape_cast %121 : vector<2x8xf32> to vector<2x8x1xf32>
    %cst_62 = arith.constant 2.82842708 : f32
    %123 = vector.broadcast %cst_62 : f32 to vector<2x8x1xf32>
    %124 = arith.mulf %122, %123 : vector<2x8x1xf32>
    %125 = tpu.reciprocal %124 {approx = true} : vector<2x8x1xf32> -> vector<2x8x1xf32>
    %126 = vector.broadcast %125 : vector<2x8x1xf32> to vector<2x8x16xf32>
    %127 = arith.mulf %120, %126 : vector<2x8x16xf32>
    %128 = arith.truncf %127 : vector<2x8x16xf32> to vector<2x8x16xbf16>
    "tpu.trace_start"() <{level = 10 : i32, message = "bqk,bkd->bqd"}> : () -> ()
    %cst_63 = arith.constant dense<0.000000e+00> : vector<2x8x8xf32>
    %129 = tpu.matmul %128, %114, %cst_63 {dimension_numbers = #tpu.dot_dimension_numbers<[2], [1], [1], [2], [0, 0, 0, 1, 1, 2], [0], [0]>} : vector<2x8x16xbf16>, vector<2x16x8xbf16>, vector<2x8x8xf32> -> vector<2x8x8xf32>
    "tpu.trace_stop"() : () -> ()
    %c0_64 = arith.constant 0 : index
    %c0_65 = arith.constant 0 : index
    %c16 = arith.constant 16 : index
    %130 = vector.load %arg19[%c0_64, %c0_65, %c16] : memref<2x8x32xf32, #tpu.memory_space<vmem>>, vector<2x8x8xf32>
    tpu.vector_store %arg19[%c0_64, %c0_65, %c16], %129 {strides = array<i32>} : memref<2x8x32xf32, #tpu.memory_space<vmem>>, vector<2x8x8xf32>,
    %131 = vector.extract_strided_slice %71 {offsets = [0, 0, 24], sizes = [2, 8, 8], strides = [1, 1, 1]} : vector<2x8x32xbf16> to vector<2x8x8xbf16>
    %132 = vector.extract_strided_slice %73 {offsets = [0, 0, 24], sizes = [2, 16, 8], strides = [1, 1, 1]} : vector<2x16x64xbf16> to vector<2x16x8xbf16>
    %133 = vector.extract_strided_slice %73 {offsets = [0, 0, 56], sizes = [2, 16, 8], strides = [1, 1, 1]} : vector<2x16x64xbf16> to vector<2x16x8xbf16>
    "tpu.trace_start"() <{level = 10 : i32, message = "bqd,bkd->bqk"}> : () -> ()
    %cst_66 = arith.constant dense<0.000000e+00> : vector<2x8x16xf32>
    %134 = tpu.matmul %131, %132, %cst_66 {dimension_numbers = #tpu.dot_dimension_numbers<[2], [2], [1], [1], [0, 0, 0, 1, 1, 1], [0], [0]>} : vector<2x8x8xbf16>, vector<2x16x8xbf16>, vector<2x8x16xf32> -> vector<2x8x16xf32>
    "tpu.trace_stop"() : () -> ()
    %cst_67 = arith.constant dense<0xFF800000> : vector<2x8xf32>
    %135 = vector.multi_reduction <maximumf>, %134, %cst_67 [2] : vector<2x8x16xf32> to vector<2x8xf32>
    %136 = vector.shape_cast %135 : vector<2x8xf32> to vector<2x8x1xf32>
    %137 = vector.broadcast %136 : vector<2x8x1xf32> to vector<2x8x16xf32>
    %138 = arith.subf %134, %137 : vector<2x8x16xf32>
    %139 = math.exp %138 : vector<2x8x16xf32>
    %cst_68 = arith.constant dense<0.000000e+00> : vector<2x8xf32>
    %140 = vector.multi_reduction <add>, %139, %cst_68 [2] : vector<2x8x16xf32> to vector<2x8xf32>
    %141 = vector.shape_cast %140 : vector<2x8xf32> to vector<2x8x1xf32>
    %cst_69 = arith.constant 2.82842708 : f32
    %142 = vector.broadcast %cst_69 : f32 to vector<2x8x1xf32>
    %143 = arith.mulf %141, %142 : vector<2x8x1xf32>
    %144 = tpu.reciprocal %143 {approx = true} : vector<2x8x1xf32> -> vector<2x8x1xf32>
    %145 = vector.broadcast %144 : vector<2x8x1xf32> to vector<2x8x16xf32>
    %146 = arith.mulf %139, %145 : vector<2x8x16xf32>
    %147 = arith.truncf %146 : vector<2x8x16xf32> to vector<2x8x16xbf16>
    "tpu.trace_start"() <{level = 10 : i32, message = "bqk,bkd->bqd"}> : () -> ()
    %cst_70 = arith.constant dense<0.000000e+00> : vector<2x8x8xf32>
    %148 = tpu.matmul %147, %133, %cst_70 {dimension_numbers = #tpu.dot_dimension_numbers<[2], [1], [1], [2], [0, 0, 0, 1, 1, 2], [0], [0]>} : vector<2x8x16xbf16>, vector<2x16x8xbf16>, vector<2x8x8xf32> -> vector<2x8x8xf32>
    "tpu.trace_stop"() : () -> ()
    %c0_71 = arith.constant 0 : index
    %c0_72 = arith.constant 0 : index
    %c24 = arith.constant 24 : index
    %149 = vector.load %arg19[%c0_71, %c0_72, %c24] : memref<2x8x32xf32, #tpu.memory_space<vmem>>, vector<2x8x8xf32>
    tpu.vector_store %arg19[%c0_71, %c0_72, %c24], %148 {strides = array<i32>} : memref<2x8x32xf32, #tpu.memory_space<vmem>>, vector<2x8x8xf32>,
    %c0_73 = arith.constant 0 : index
    %c0_74 = arith.constant 0 : index
    %c0_75 = arith.constant 0 : index
    %150 = vector.load %arg19[%c0_73, %c0_74, %c0_75] : memref<2x8x32xf32, #tpu.memory_space<vmem>>, vector<2x8x32xf32>
    %151 = arith.truncf %150 : vector<2x8x32xf32> to vector<2x8x32xbf16>
    %152 = vector.shape_cast %151 : vector<2x8x32xbf16> to vector<16x32xbf16>
    %c0_76 = arith.constant 0 : index
    %c0_77 = arith.constant 0 : index
    %c0_78 = arith.constant 0 : index
    %153 = vector.load %arg10[%c0_76, %c0_77, %c0_78] : memref<1x32x32xbf16, #tpu.memory_space<vmem>>, vector<1x32x32xbf16>
    %154 = vector.shape_cast %153 : vector<1x32x32xbf16> to vector<32x32xbf16>
    %cst_79 = arith.constant dense<0.000000e+00> : vector<16x32xf32>
    %155 = tpu.matmul %152, %154, %cst_79 {dimension_numbers = #tpu.dot_dimension_numbers<[1], [0], [0], [1], [0, 0, 1, 1], [], []>} : vector<16x32xbf16>, vector<32x32xbf16>, vector<16x32xf32> -> vector<16x32xf32>
    %156 = vector.shape_cast %155 : vector<16x32xf32> to vector<2x8x32xf32>
    %157 = arith.addf %3, %156 : vector<2x8x32xf32>
    %c0_80 = arith.constant 0 : index
    %c0_81 = arith.constant 0 : index
    %c0_82 = arith.constant 0 : index
    %158 = vector.load %arg11[%c0_80, %c0_81, %c0_82] : memref<1x1x32xf32, #tpu.memory_space<vmem>>, vector<1x1x32xf32>
    %159 = vector.shape_cast %158 : vector<1x1x32xf32> to vector<1x32xf32>
    %c0_83 = arith.constant 0 : index
    %c0_84 = arith.constant 0 : index
    %c0_85 = arith.constant 0 : index
    %160 = vector.load %arg12[%c0_83, %c0_84, %c0_85] : memref<1x1x32xf32, #tpu.memory_space<vmem>>, vector<1x1x32xf32>
    %161 = vector.shape_cast %160 : vector<1x1x32xf32> to vector<1x32xf32>
    %cst_86 = arith.constant dense<0.000000e+00> : vector<2x8xf32>
    %162 = vector.multi_reduction <add>, %157, %cst_86 [2] : vector<2x8x32xf32> to vector<2x8xf32>
    %163 = vector.shape_cast %162 : vector<2x8xf32> to vector<2x8x1xf32>
    %cst_87 = arith.constant 3.200000e+01 : f32
    %164 = vector.broadcast %cst_87 : f32 to vector<2x8x1xf32>
    %165 = arith.divf %163, %164 : vector<2x8x1xf32>
    %166 = vector.broadcast %165 : vector<2x8x1xf32> to vector<2x8x32xf32>
    %167 = arith.subf %157, %166 : vector<2x8x32xf32>
    %168 = arith.mulf %167, %167 : vector<2x8x32xf32>
    %cst_88 = arith.constant dense<0.000000e+00> : vector<2x8xf32>
    %169 = vector.multi_reduction <add>, %168, %cst_88 [2] : vector<2x8x32xf32> to vector<2x8xf32>
    %170 = vector.shape_cast %169 : vector<2x8xf32> to vector<2x8x1xf32>
    %cst_89 = arith.constant 3.200000e+01 : f32
    %171 = vector.broadcast %cst_89 : f32 to vector<2x8x1xf32>
    %172 = arith.divf %170, %171 : vector<2x8x1xf32>
    %cst_90 = arith.constant 9.99999974E-6 : f32
    %173 = vector.broadcast %cst_90 : f32 to vector<2x8x1xf32>
    %174 = arith.addf %172, %173 : vector<2x8x1xf32>
    %175 = math.rsqrt %174 : vector<2x8x1xf32>
    %176 = vector.broadcast %175 : vector<2x8x1xf32> to vector<2x8x32xf32>
    %177 = arith.mulf %167, %176 : vector<2x8x32xf32>
    %178 = vector.shape_cast %159 : vector<1x32xf32> to vector<1x1x32xf32>
    %179 = vector.broadcast %178 : vector<1x1x32xf32> to vector<2x8x32xf32>
    %180 = arith.mulf %177, %179 : vector<2x8x32xf32>
    %181 = vector.shape_cast %161 : vector<1x32xf32> to vector<1x1x32xf32>
    %182 = vector.broadcast %181 : vector<1x1x32xf32> to vector<2x8x32xf32>
    %183 = arith.addf %180, %182 : vector<2x8x32xf32>
    %184 = arith.truncf %183 : vector<2x8x32xf32> to vector<2x8x32xbf16>
    %185 = vector.shape_cast %184 : vector<2x8x32xbf16> to vector<16x32xbf16>
    %c0_91 = arith.constant 0 : index
    %c0_92 = arith.constant 0 : index
    %c0_93 = arith.constant 0 : index
    %186 = vector.load %arg13[%c0_91, %c0_92, %c0_93] : memref<1x32x128xbf16, #tpu.memory_space<vmem>>, vector<1x32x128xbf16>
    %187 = vector.shape_cast %186 : vector<1x32x128xbf16> to vector<32x128xbf16>
    %cst_94 = arith.constant dense<0.000000e+00> : vector<16x128xf32>
    %188 = tpu.matmul %185, %187, %cst_94 {dimension_numbers = #tpu.dot_dimension_numbers<[1], [0], [0], [1], [0, 0, 1, 1], [], []>} : vector<16x32xbf16>, vector<32x128xbf16>, vector<16x128xf32> -> vector<16x128xf32>
    %cst_95 = arith.constant 5.000000e-01 : f32
    %189 = vector.broadcast %cst_95 : f32 to vector<16x128xf32>
    %190 = arith.mulf %189, %188 : vector<16x128xf32>
    %cst_96 = arith.constant 0.707106769 : f32
    %191 = vector.broadcast %cst_96 : f32 to vector<16x128xf32>
    %192 = arith.mulf %188, %191 : vector<16x128xf32>
    %193 = math.erf %192 : vector<16x128xf32>
    %cst_97 = arith.constant 1.000000e+00 : f32
    %194 = vector.broadcast %cst_97 : f32 to vector<16x128xf32>
    %195 = arith.addf %194, %193 : vector<16x128xf32>
    %196 = arith.mulf %190, %195 : vector<16x128xf32>
    %197 = arith.truncf %196 : vector<16x128xf32> to vector<16x128xbf16>
    %c0_98 = arith.constant 0 : index
    %c0_99 = arith.constant 0 : index
    %c0_100 = arith.constant 0 : index
    %198 = vector.load %arg14[%c0_98, %c0_99, %c0_100] : memref<1x128x32xbf16, #tpu.memory_space<vmem>>, vector<1x128x32xbf16>
    %199 = vector.shape_cast %198 : vector<1x128x32xbf16> to vector<128x32xbf16>
    %cst_101 = arith.constant dense<0.000000e+00> : vector<16x32xf32>
    %200 = tpu.matmul %197, %199, %cst_101 {dimension_numbers = #tpu.dot_dimension_numbers<[1], [0], [0], [1], [0, 0, 1, 1], [], []>} : vector<16x128xbf16>, vector<128x32xbf16>, vector<16x32xf32> -> vector<16x32xf32>
    %201 = vector.shape_cast %200 : vector<16x32xf32> to vector<2x8x32xf32>
    %202 = arith.addf %157, %201 : vector<2x8x32xf32>
    %c1_i32 = arith.constant 1 : i32
    %203 = arith.cmpi eq, %arg1, %c1_i32 : i32
    %204 = arith.extui %203 : i1 to i32
    %c0_i32_102 = arith.constant 0 : i32
    %205 = arith.cmpi ne, %204, %c0_i32_102 : i32
    scf.if %205 {
      %c0_105 = arith.constant 0 : index
      %c0_106 = arith.constant 0 : index
      %209 = vector.load %arg15[%c0_105, %c0_106] : memref<1x32xf32, #tpu.memory_space<vmem>>, vector<1x32xf32>
      %c0_107 = arith.constant 0 : index
      %c0_108 = arith.constant 0 : index
      %210 = vector.load %arg16[%c0_107, %c0_108] : memref<1x32xf32, #tpu.memory_space<vmem>>, vector<1x32xf32>
      %cst_109 = arith.constant dense<0.000000e+00> : vector<2x8xf32>
      %211 = vector.multi_reduction <add>, %202, %cst_109 [2] : vector<2x8x32xf32> to vector<2x8xf32>
      %212 = vector.shape_cast %211 : vector<2x8xf32> to vector<2x8x1xf32>
      %cst_110 = arith.constant 3.200000e+01 : f32
      %213 = vector.broadcast %cst_110 : f32 to vector<2x8x1xf32>
      %214 = arith.divf %212, %213 : vector<2x8x1xf32>
      %215 = vector.broadcast %214 : vector<2x8x1xf32> to vector<2x8x32xf32>
      %216 = arith.subf %202, %215 : vector<2x8x32xf32>
      %217 = arith.mulf %216, %216 : vector<2x8x32xf32>
      %cst_111 = arith.constant dense<0.000000e+00> : vector<2x8xf32>
      %218 = vector.multi_reduction <add>, %217, %cst_111 [2] : vector<2x8x32xf32> to vector<2x8xf32>
      %219 = vector.shape_cast %218 : vector<2x8xf32> to vector<2x8x1xf32>
      %cst_112 = arith.constant 3.200000e+01 : f32
      %220 = vector.broadcast %cst_112 : f32 to vector<2x8x1xf32>
      %221 = arith.divf %219, %220 : vector<2x8x1xf32>
      %cst_113 = arith.constant 9.99999974E-6 : f32
      %222 = vector.broadcast %cst_113 : f32 to vector<2x8x1xf32>
      %223 = arith.addf %221, %222 : vector<2x8x1xf32>
      %224 = math.rsqrt %223 : vector<2x8x1xf32>
      %225 = vector.broadcast %224 : vector<2x8x1xf32> to vector<2x8x32xf32>
      %226 = arith.mulf %216, %225 : vector<2x8x32xf32>
      %227 = vector.shape_cast %209 : vector<1x32xf32> to vector<1x1x32xf32>
      %228 = vector.broadcast %227 : vector<1x1x32xf32> to vector<2x8x32xf32>
      %229 = arith.mulf %226, %228 : vector<2x8x32xf32>
      %230 = vector.shape_cast %210 : vector<1x32xf32> to vector<1x1x32xf32>
      %231 = vector.broadcast %230 : vector<1x1x32xf32> to vector<2x8x32xf32>
      %232 = arith.addf %229, %231 : vector<2x8x32xf32>
      %c0_114 = arith.constant 0 : index
      %c0_115 = arith.constant 0 : index
      %c0_116 = arith.constant 0 : index
      %233 = vector.load %arg17[%c0_114, %c0_115, %c0_116] : memref<2x8x32xf32, #tpu.memory_space<vmem>>, vector<2x8x32xf32>
      tpu.vector_store %arg17[%c0_114, %c0_115, %c0_116], %232 {strides = array<i32>} : memref<2x8x32xf32, #tpu.memory_space<vmem>>, vector<2x8x32xf32>,
    } else {
    }
    %c1_i32_103 = arith.constant 1 : i32
    %206 = arith.cmpi slt, %arg1, %c1_i32_103 : i32
    %207 = arith.extui %206 : i1 to i32
    %c0_i32_104 = arith.constant 0 : i32
    %208 = arith.cmpi ne, %207, %c0_i32_104 : i32
    scf.if %208 {
      %c0_105 = arith.constant 0 : index
      %c0_106 = arith.constant 0 : index
      %c0_107 = arith.constant 0 : index
      %209 = vector.load %arg17[%c0_105, %c0_106, %c0_107] : memref<2x8x32xf32, #tpu.memory_space<vmem>>, vector<2x8x32xf32>
      tpu.vector_store %arg17[%c0_105, %c0_106, %c0_107], %202 {strides = array<i32>} : memref<2x8x32xf32, #tpu.memory_space<vmem>>, vector<2x8x32xf32>,
    } else {
    }
    return
  }
  func.func @transform_0(%arg0: i32, %arg1: i32) -> (i32, i32, i32) {
    %c0_i32 = arith.constant 0 : i32
    %c0_i32_0 = arith.constant 0 : i32
    %c0_i32_1 = arith.constant 0 : i32
    return %arg0, %c0_i32, %c0_i32_0 : i32, i32, i32
  }
  func.func @transform_1(%arg0: i32, %arg1: i32) -> (i32, i32) {
    %c0_i32 = arith.constant 0 : i32
    %c0_i32_0 = arith.constant 0 : i32
    %c0_i32_1 = arith.constant 0 : i32
    return %c0_i32, %c0_i32_0 : i32, i32
  }
  func.func @transform_2(%arg0: i32, %arg1: i32) -> (i32, i32, i32) {
    %c0_i32 = arith.constant 0 : i32
    %c0_i32_0 = arith.constant 0 : i32
    %c0_i32_1 = arith.constant 0 : i32
    return %arg1, %c0_i32, %c0_i32_0 : i32, i32, i32
  }
  func.func @transform_3(%arg0: i32, %arg1: i32) -> (i32, i32, i32) {
    %c0_i32 = arith.constant 0 : i32
    %c0_i32_0 = arith.constant 0 : i32
    %c0_i32_1 = arith.constant 0 : i32
    return %arg1, %c0_i32, %c0_i32_0 : i32, i32, i32
  }
  func.func @transform_4(%arg0: i32, %arg1: i32) -> (i32, i32, i32) {
    %c0_i32 = arith.constant 0 : i32
    %c0_i32_0 = arith.constant 0 : i32
    %c0_i32_1 = arith.constant 0 : i32
    return %arg1, %c0_i32, %c0_i32_0 : i32, i32, i32
  }
  func.func @transform_5(%arg0: i32, %arg1: i32) -> (i32, i32, i32) {
    %c0_i32 = arith.constant 0 : i32
    %c0_i32_0 = arith.constant 0 : i32
    %c0_i32_1 = arith.constant 0 : i32
    return %arg1, %c0_i32, %c0_i32_0 : i32, i32, i32
  }
  func.func @transform_6(%arg0: i32, %arg1: i32) -> (i32, i32, i32) {
    %c0_i32 = arith.constant 0 : i32
    %c0_i32_0 = arith.constant 0 : i32
    %c0_i32_1 = arith.constant 0 : i32
    return %arg1, %c0_i32, %c0_i32_0 : i32, i32, i32
  }
  func.func @transform_7(%arg0: i32, %arg1: i32) -> (i32, i32, i32) {
    %c0_i32 = arith.constant 0 : i32
    %c0_i32_0 = arith.constant 0 : i32
    %c0_i32_1 = arith.constant 0 : i32
    return %arg1, %c0_i32, %c0_i32_0 : i32, i32, i32
  }
  func.func @transform_8(%arg0: i32, %arg1: i32) -> (i32, i32, i32) {
    %c0_i32 = arith.constant 0 : i32
    %c0_i32_0 = arith.constant 0 : i32
    %c0_i32_1 = arith.constant 0 : i32
    return %arg1, %c0_i32, %c0_i32_0 : i32, i32, i32
  }
  func.func @transform_9(%arg0: i32, %arg1: i32) -> (i32, i32, i32) {
    %c0_i32 = arith.constant 0 : i32
    %c0_i32_0 = arith.constant 0 : i32
    %c0_i32_1 = arith.constant 0 : i32
    return %arg1, %c0_i32, %c0_i32_0 : i32, i32, i32
  }
  func.func @transform_10(%arg0: i32, %arg1: i32) -> (i32, i32, i32) {
    %c0_i32 = arith.constant 0 : i32
    %c0_i32_0 = arith.constant 0 : i32
    %c0_i32_1 = arith.constant 0 : i32
    return %arg1, %c0_i32, %c0_i32_0 : i32, i32, i32
  }
  func.func @transform_11(%arg0: i32, %arg1: i32) -> (i32, i32, i32) {
    %c0_i32 = arith.constant 0 : i32
    %c0_i32_0 = arith.constant 0 : i32
    %c0_i32_1 = arith.constant 0 : i32
    return %arg1, %c0_i32, %c0_i32_0 : i32, i32, i32
  }
  func.func @transform_12(%arg0: i32, %arg1: i32) -> (i32, i32, i32) {
    %c0_i32 = arith.constant 0 : i32
    %c0_i32_0 = arith.constant 0 : i32
    %c0_i32_1 = arith.constant 0 : i32
    return %arg1, %c0_i32, %c0_i32_0 : i32, i32, i32
  }
  func.func @transform_13(%arg0: i32, %arg1: i32) -> (i32, i32) {
    %c0_i32 = arith.constant 0 : i32
    %c0_i32_0 = arith.constant 0 : i32
    %c0_i32_1 = arith.constant 0 : i32
    return %c0_i32, %c0_i32_0 : i32, i32
  }
  func.func @transform_14(%arg0: i32, %arg1: i32) -> (i32, i32) {
    %c0_i32 = arith.constant 0 : i32
    %c0_i32_0 = arith.constant 0 : i32
    %c0_i32_1 = arith.constant 0 : i32
    return %c0_i32, %c0_i32_0 : i32, i32
  }
  func.func @transform_15(%arg0: i32, %arg1: i32) -> (i32, i32, i32) {
    %c0_i32 = arith.constant 0 : i32
    %c0_i32_0 = arith.constant 0 : i32
    %c0_i32_1 = arith.constant 0 : i32
    return %arg0, %c0_i32, %c0_i32_0 : i32, i32, i32
  }
}

</mosaic_0001>

<bundles_post_ra>
// kernel: tpu_custom_call.1
= control target key start
LH: loop header
LB: loop body
LE: loop exit
PB: predicated region body
PF: predicated region fallthrough
CT: control target
= control target key end

     0   :  { %s5061_s0 = inlined_call_operand.hbm [shape: f32[4,8,32], index: 0, kind: input, shape index: {}]   ;;  %s5062_s1 = inlined_call_operand.hbm [shape: f32[8,32], index: 1, kind: input, shape index: {}]   ;;  %s5063_s2 = inlined_call_operand.hbm [shape: f32[2,1,32], index: 2, kind: input, shape index: {}]   ;;  %s5064_s3 = inlined_call_operand.hbm [shape: f32[2,1,32], index: 3, kind: input, shape index: {}]   ;;  %s5065_s4 = inlined_call_operand.hbm [shape: f32[2,1,32], index: 4, kind: input, shape index: {}]   ;;  %s5066_s5 = inlined_call_operand.hbm [shape: f32[2,1,32], index: 5, kind: input, shape index: {}]   ;;  %s5067_s6 = inlined_call_operand.hbm [shape: bf16[2,32,32], index: 6, kind: input, shape index: {}]   ;;  %s5068_s7 = inlined_call_operand.hbm [shape: bf16[2,32,64], index: 7, kind: input, shape index: {}]   ;;  %s5069_s8 = inlined_call_operand.hbm [shape: bf16[2,32,32], index: 8, kind: input, shape index: {}]   ;;  %s5070_s9 = inlined_call_operand.hbm [shape: f32[2,1,32], index: 9, kind: input, shape index: {}]   ;;  %s5071_s10 = inlined_call_operand.hbm [shape: f32[2,1,32], index: 10, kind: input, shape index: {}]   ;;  %s5072_s11 = inlined_call_operand.hbm [shape: bf16[2,32,128], index: 11, kind: input, shape index: {}]   ;;  %s5073_s12 = inlined_call_operand.hbm [shape: bf16[2,128,32], index: 12, kind: input, shape index: {}]   ;;  %s5074_s13 = inlined_call_operand.hbm [shape: f32[1,32], index: 13, kind: input, shape index: {}]   ;;  %s5075_s14 = inlined_call_operand.hbm [shape: f32[1,32], index: 14, kind: input, shape index: {}]   ;;  %s5076_s15 = inlined_call_operand.hbm [shape: f32[4,8,32], index: 15, kind: output, shape index: {}]  }
   0x1   :  { %5112 = sst [smem:[#allocation42_spill]] %s5061_s0 }
   0x2   :  { %5113 = sst [smem:[#allocation43_spill]] %s5062_s1 }
   0x3   :  { %5114 = sst [smem:[#allocation44_spill]] %s5063_s2 }
   0x4   :  { %5115 = sst [smem:[#allocation45_spill]] %s5064_s3 }
   0x5   :  { %5116 = sst [smem:[#allocation46_spill]] %s5065_s4 }
   0x6   :  { %5117 = sst [smem:[#allocation47_spill]] %s5066_s5 }
   0x7   :  { %5118 = sst [smem:[#allocation48_spill]] %s5067_s6 }
   0x8   :  { %5119 = sst [smem:[#allocation49_spill]] %s5068_s7 }
   0x9   :  { %5120 = sst [smem:[#allocation50_spill]] %s5069_s8 }
   0xa   :  { %5121 = sst [smem:[#allocation51_spill]] %s5070_s9 }
   0xb   :  { %5122 = sst [smem:[#allocation52_spill]] %s5071_s10 }
   0xc   :  { %5123 = sst [smem:[#allocation53_spill]] %s5072_s11 }
   0xd   :  { %5124 = sst [smem:[#allocation54_spill]] %s5073_s12 }
   0xe   :  { %5125 = sst [smem:[#allocation55_spill]] %s5074_s13 }
   0xf   :  { %5126 = sst [smem:[#allocation56_spill]] %s5075_s14 }
  0x10   :  { %5127 = sst [smem:[#allocation57_spill]] %s5076_s15 }
  0x11   :  { %20 = vsyncpa [#allocation5], 0 }
  0x12   :  { %22 = vsyncpa [#allocation5 + $0x1], 0 }
  0x13   :  { %23 = vsyncpa [#allocation8], 0 }
  0x14   :  { %24 = vsyncpa [#allocation22], 0 }
  0x15   :  { %25 = vsyncpa [#allocation6], 0 }
  0x16   :  { %27 = vsyncpa [#allocation6 + $0x1], 0  ;;  %s4067_s18 = smov 0   ;;  %s4069_s19 = smov 0  }
  0x17   :  { %s4071_s20 = smov 0   ;;  %s4073_s21 = smov 0  }
  0x18   :  { %s4075_s22 = smov 0   ;;  %s4077_s23 = smov 0  }
  0x19   :  { %s4079_s24 = smov 0   ;;  %s4081_s25 = smov 0  }
  0x1a   :  { %s4083_s26 = smov 0   ;;  %s4085_s27 = smov 0  }
  0x1b   :  { %s4087_s28 = smov 0  }
  0x1c LB: > { %5128 = sst [smem:[#allocation30_spill]] %s3912_s18  ;;  %s42_s29 = sadd.s32 1, %s3944_s26  ;;  %s3952_s28 = sphi %s4087_s28, %s33_s28   ;;  %s3948_s27 = sphi %s4085_s27, %s5211_s27   ;;  %s3944_s26 = sphi %s4083_s26, %s5213_s26   ;;  %s3940_s25 = sphi %s4081_s25, %s5209_s25   ;;  %s3936_s24 = sphi %s4079_s24, %s5212_s24   ;;  %s3932_s23 = sphi %s4077_s23, %s5208_s23   ;;  %s3928_s22 = sphi %s4075_s22, %s5207_s22   ;;  %s3924_s21 = sphi %s4073_s21, %s5206_s21   ;;  %s3920_s20 = sphi %s4071_s20, %s5205_s20   ;;  %s3916_s19 = sphi %s4069_s19, %s5204_s19   ;;  %s3912_s18 = sphi %s4067_s18, %s5203_s18  }
  0x1d   : > { %5129 = sst [smem:[#allocation31_spill]] %s3916_s19  ;;  %s45_s30 = sadd.s32 1, %s3948_s27 }
  0x1e   : > { %5130 = sst [smem:[#allocation32_spill]] %s3920_s20  ;;  %p43_p0 = scmp.ge.s32.totalorder %s42_s29, 2 }
  0x1f   : > { %5131 = sst [smem:[#allocation33_spill]] %s3928_s22  ;;  %s52_s16 = sadd.s32 1, %s3932_s23 }
  0x20   : > { %5132 = sst [smem:[#allocation34_spill]] %s3932_s23  ;;  %p5089_p1 = scmp.ne.s32.totalorder %s3932_s23, %s3928_s22 }
  0x21   : > { %5133 = sst [smem:[#allocation35_spill]] %s3936_s24  ;;  %p60_p2 = scmp.eq.s32.totalorder %s3952_s28, 0 }
  0x22   : > { %5134 = sst [smem:[#allocation36_spill]] %s3940_s25  ;;  %s5215_s29 = smov (%p43_p0, %s42_s29), 0 }
  0x23   : > { %5135 = sst [smem:[#allocation37_spill]] %s3948_s27  ;;  %s5217_s30 = smov (!%p43_p0, %s45_s30), %s3948_s27 }
  0x24   : > { %5136 = sst [smem:[#allocation38_spill]] %s5215_s29  ;;  %p4134_p3 = por %p60_p2, %p5089_p1 }
  0x25   : > { %s96_s15 = ssub.s32 %s3944_s26, %s5215_s29  ;;  %p47_p4 = scmp.ge.s32.totalorder %s5217_s30, 2 }
  0x26   : > { %p97_p5 = scmp.eq.s32.totalorder %s96_s15, 0  ;;  %s99_s25 = sadd.s32 1, %s3920_s20 }
  0x27   : > { %p106_p6 = scmp.ne.s32.totalorder %s3920_s20, %s3916_s19  ;;  %s5219_s30 = smov (%p47_p4, %s5217_s30), 0 }
  0x28   : > { %5138 = sst [smem:[#allocation39_spill]] %s5219_s30  ;;  %s49_s12 = ssub.s32 %s3948_s27, %s5219_s30 }
  0x29   : > { %s4146_s24 = scalar_select %p97_p5, %s3920_s20, %s99_s25  }
  0x2a   : > { %p4150_p7 = por %p106_p6, %p60_p2  ;;  %p50_p8 = scmp.eq.s32.totalorder %s49_s12, 0 }
  0x2b   : > { %5139 = sst [smem:[#allocation40_spill]] %s4146_s24  ;;  %p5090_p9 = scmp.lt.s32.totalorder %s3952_s28, 4 }
  0x2c   : > { %s497_s13 = sand.u32 1, %s3952_s28   ;;  %s499_s15 = sand.u32 1, %s3932_s23  }
  0x2d   : > { %s4157_s29 = scalar_select %p50_p8, %s3932_s23, %s52_s16  }
  0x2e   : > { %s2790_s1 = sshll.u32 %s499_s15, 4  ;;  %s2883_s11 = sshll.u32 %s3948_s27, 8 }
  0x2f   : > { %5141 = sst [smem:[#allocation41_spill]] %s4157_s29  ;;  %s501_s25 = scalar_lea.vmem [#allocation4], %s2790_s1 }
  0x30   : > { %s5142_s0 = sld [smem:[#allocation42_spill]]  ;;  %s508_s30 = sshll.u32 %s501_s25, 4  ;;  %s4174_s30 = int_to_ptr.vmem [resolvable:$true] %s508_s30 }
  0x31   : > { %p4170_p10 = pnand %p5090_p9, %p4134_p3  ;;  %s4176_s16 = scalar_lea.sflag [#allocation5], %s497_s13 }
  0x33   : > { %p3372_p12 = pneg %p4170_p10 }
  0x36   : > { %s4164_s22 = scalar_lea.hbm %s5142_s0, %s2883_s11  ;;  %s3375_s19 = scalar_lea.hbm %s5142_s0, 512 }
  0x37   : > { %s3370_s11 = scalar_lea.hbm %s4164_s22, 256  ;;  %p3376_p2 = scmp.lt.u32.totalorder %s4164_s22, %s5142_s0 }
  0x38   : > { %p3371_p11 = scmp.ne.s32.totalorder %s4164_s22, %s3370_s11  ;;  %p3377_p3 = scmp.lt.u32.totalorder %s3375_s19, %s3370_s11 }
  0x39   : > { %p3379_p5 = scmp.lt.u32.totalorder %s3370_s11, %s4164_s22 }
  0x3a   : > { %p3373_p13 = pnand %p3372_p12, %p3371_p11  ;;  %p3378_p4 = por %p3377_p3, %p3376_p2 }
  0x3c   : > { %p3374_p0 = pneg %p3373_p13  ;;  %p3380_p6 = por %p3379_p5, %p3378_p4 }
  0x3e   : > { %p3381_p8 = pnand %p3380_p6, %p3374_p0 }
  0x40   : > { %3384 = shalt.err (!%p3381_p8)
}
  0x41   : > { %s3385_s13 = scalar_lea.vmem %s4174_s30, 256  ;;  %s3954_s25 = smov [#allocation4]  }
  0x42   : > { %p3386_p11 = scmp.ne.s32.totalorder %s4174_s30, %s3385_s13  ;;  %s3390_s1 = sshll.u32 %s3954_s25, 4  ;;  %s3391_s1 = int_to_ptr.vmem [resolvable:$false] %s3390_s1 }
  0x43   : > { %s3392_s18 = scalar_lea.vmem %s3391_s1, 512  ;;  %p3393_p9 = scmp.lt.s32.totalorder %s4174_s30, %s3391_s1 }
  0x44   : > { %p3388_p13 = pnand %p3386_p11, %p3372_p12  ;;  %p3394_p2 = scmp.lt.s32.totalorder %s3392_s18, %s3385_s13 }
  0x46   : > { %p3389_p1 = pneg %p3388_p13  ;;  %p3395_p3 = por %p3394_p2, %p3393_p9 }
  0x48   : > { %p3396_p4 = pnand %p3395_p3, %p3389_p1 }
  0x4a   : > { %3399 = shalt.err (!%p3396_p4)
}
  0x4b   : > { %s3955_s11 = smov 128   ;;  %s3956_s19 = smov 8  }
  0x4c   : > { %3148 = dma.hbm_to_vmem [thread:$0]  (!%p4170_p10), %s4164_s22, 256, %s4174_s30, %s4176_s16, %s3955_s11, %s3955_s11, %s3956_s19  }
  0x4d   : > { %p5144_p12 = scmp.lt.s32.totalorder %s3952_s28, 4  ;;  %s4213_s15 = sand.u32 1, %s3920_s20  }
  0x4e   : > { %s4216_s13 = sshll.u32 %s3944_s26, 4  ;;  %s5146_s2 = sld [smem:[#allocation44_spill]] }
  0x4f   : > { %p4208_p0 = pnand %p5144_p12, %p4150_p7  ;;  %s521_s14 = scalar_lea.vmem [#allocation9], %s4213_s15 }
  0x50   : > { %s528_s22 = sshll.u32 %s521_s14, 4  ;;  %s5147_s3 = sld [smem:[#allocation45_spill]]  ;;  %s4225_s22 = int_to_ptr.vmem [resolvable:$true] %s528_s22 }
  0x51   : > { %s5145_s17 = scalar_select %p4208_p0, 1, 0 }
  0x52   : > { %p4237_p7 = pneg %p4208_p0 }
  0x54   : > { %s4222_s18 = scalar_lea.hbm %s5146_s2, %s4216_s13  ;;  %s3405_s0 = scalar_lea.hbm %s5146_s2, 32 }
  0x55   : > { %s3400_s19 = scalar_lea.hbm %s4222_s18, 16  ;;  %p3406_p5 = scmp.lt.u32.totalorder %s4222_s18, %s5146_s2 }
  0x56   : > { %s4231_s11 = scalar_lea.hbm %s5147_s3, %s4216_s13  ;;  %p3401_p1 = scmp.ne.s32.totalorder %s4222_s18, %s3400_s19 }
  0x57   : > { %s5148_s25 = scalar_select %p4237_p7, 1, 0 }
  0x58   : > { %p3403_p9 = pnand %p4237_p7, %p3401_p1  ;;  %p3407_p6 = scmp.lt.u32.totalorder %s3405_s0, %s3400_s19 }
  0x59   : > { %p3409_p11 = scmp.lt.u32.totalorder %s3400_s19, %s4222_s18 }
  0x5a   : > { %p3404_p10 = pneg %p3403_p9  ;;  %p3408_p8 = por %p3407_p6, %p3406_p5 }
  0x5c   : > { %p3410_p13 = por %p3409_p11, %p3408_p8 }
  0x5e   : > { %p3411_p2 = pnand %p3410_p13, %p3404_p10 }
  0x60   : > { %3414 = shalt.err (!%p3411_p2)
}
  0x61   : > { %s3415_s30 = scalar_lea.vmem %s4225_s22, 16  ;;  %s3957_s12 = smov [#allocation9]  }
  0x62   : > { %p3416_p3 = scmp.ne.s32.totalorder %s4225_s22, %s3415_s30  ;;  %s3420_s1 = sshll.u32 %s3957_s12, 4  ;;  %s3421_s1 = int_to_ptr.vmem [resolvable:$false] %s3420_s1 }
  0x63   : > { %s3422_s27 = scalar_lea.vmem %s3421_s1, 32  ;;  %p3423_p1 = scmp.lt.s32.totalorder %s4225_s22, %s3421_s1 }
  0x64   : > { %p3418_p4 = pnand %p3416_p3, %p4237_p7  ;;  %p3424_p9 = scmp.lt.s32.totalorder %s3422_s27, %s3415_s30 }
  0x66   : > { %p3419_p12 = pneg %p3418_p4  ;;  %p3425_p5 = por %p3424_p9, %p3423_p1 }
  0x68   : > { %p3426_p6 = pnand %p3425_p5, %p3419_p12 }
  0x6a   : > { %3429 = shalt.err (!%p3426_p6)
}
  0x6b   : > { %3151 = dma.hbm_to_vmem [thread:$0]  (!%p4208_p0), %s4222_s18, 16, %s4225_s22, %s4176_s16  }
  0x6c   : > { %s538_s0 = scalar_lea.vmem [#allocation10], %s4213_s15  ;;  %s5149_s4 = sld [smem:[#allocation46_spill]] }
  0x6d   : > { %s545_s29 = sshll.u32 %s538_s0, 4  ;;  %s3430_s12 = scalar_lea.hbm %s4231_s11, 16  ;;  %s546_s29 = int_to_ptr.vmem [resolvable:$true] %s545_s29 }
  0x6e   : > { %p3431_p10 = scmp.ne.s32.totalorder %s4231_s11, %s3430_s12  ;;  %s3435_s2 = scalar_lea.hbm %s5147_s3, 32 }
  0x6f   : > { %p3436_p13 = scmp.lt.u32.totalorder %s4231_s11, %s5147_s3  ;;  %p3437_p2 = scmp.lt.u32.totalorder %s3435_s2, %s3430_s12 }
  0x70   : > { %p3433_p8 = pnand %p3431_p10, %p4237_p7  ;;  %p3439_p4 = scmp.lt.u32.totalorder %s3430_s12, %s4231_s11 }
  0x71   : > { %p3438_p3 = por %p3437_p2, %p3436_p13 }
  0x72   : > { %s4266_s30 = scalar_lea.hbm %s5149_s4, %s4216_s13  ;;  %p3434_p11 = pneg %p3433_p8 }
  0x73   : > { %p3440_p12 = por %p3439_p4, %p3438_p3 }
  0x75   : > { %p3441_p1 = pnand %p3440_p12, %p3434_p11 }
  0x77   : > { %3444 = shalt.err (!%p3441_p1)
}
  0x78   : > { %s3445_s18 = scalar_lea.vmem %s546_s29, 16  ;;  %s3958_s22 = smov [#allocation10]  }
  0x79   : > { %p3446_p9 = scmp.ne.s32.totalorder %s546_s29, %s3445_s18  ;;  %s3450_s0 = sshll.u32 %s3958_s22, 4  ;;  %s3451_s0 = int_to_ptr.vmem [resolvable:$false] %s3450_s0 }
  0x7a   : > { %s3452_s19 = scalar_lea.vmem %s3451_s0, 32  ;;  %p3453_p10 = scmp.lt.s32.totalorder %s546_s29, %s3451_s0 }
  0x7b   : > { %p3448_p5 = pnand %p3446_p9, %p4237_p7  ;;  %p3454_p8 = scmp.lt.s32.totalorder %s3452_s19, %s3445_s18 }
  0x7d   : > { %p3449_p6 = pneg %p3448_p5  ;;  %p3455_p0 = por %p3454_p8, %p3453_p10 }
  0x7f   : > { %p3456_p2 = pnand %p3455_p0, %p3449_p6 }
  0x81   : > { %3459 = shalt.err (!%p3456_p2)
}
  0x82   : > { %p5150_p13 = scmp.ne.s32.totalorder %s5145_s17, 0  ;;  %s555_s2 = scalar_lea.vmem [#allocation11], %s4213_s15 }
  0x83   : > { %s562_s20 = sshll.u32 %s555_s2, 4  ;;  %s5151_s5 = sld [smem:[#allocation47_spill]]  ;;  %s563_s20 = int_to_ptr.vmem [resolvable:$true] %s562_s20 }
  0x84   : > { %3154 = dma.hbm_to_vmem [thread:$0]  (!%p5150_p13), %s4231_s11, 16, %s546_s29, %s4176_s16  }
  0x85   : > { %s3460_s1 = scalar_lea.hbm %s4266_s30, 16  ;;  %s3465_s22 = scalar_lea.hbm %s5149_s4, 32 }
  0x86   : > { %p3461_p0 = scmp.ne.s32.totalorder %s4266_s30, %s3460_s1  ;;  %p3466_p4 = scmp.lt.u32.totalorder %s4266_s30, %s5149_s4 }
  0x87   : > { %p3467_p12 = scmp.lt.u32.totalorder %s3465_s22, %s3460_s1  ;;  %p3469_p9 = scmp.lt.u32.totalorder %s3460_s1, %s4266_s30 }
  0x88   : > { %p3463_p11 = pnand %p3461_p0, %p4237_p7 }
  0x89   : > { %s4291_s12 = scalar_lea.hbm %s5151_s5, %s4216_s13  ;;  %p3468_p1 = por %p3467_p12, %p3466_p4 }
  0x8a   : > { %p3464_p3 = pneg %p3463_p11 }
  0x8b   : > { %p3470_p5 = por %p3469_p9, %p3468_p1 }
  0x8d   : > { %p3471_p6 = pnand %p3470_p5, %p3464_p3 }
  0x8f   : > { %3474 = shalt.err (!%p3471_p6)
}
  0x90   : > { %s3475_s11 = scalar_lea.vmem %s563_s20, 16  ;;  %s3959_s29 = smov [#allocation11]  }
  0x91   : > { %p3476_p10 = scmp.ne.s32.totalorder %s563_s20, %s3475_s11  ;;  %s3480_s2 = sshll.u32 %s3959_s29, 4  ;;  %s3481_s2 = int_to_ptr.vmem [resolvable:$false] %s3480_s2 }
  0x92   : > { %s3482_s24 = scalar_lea.vmem %s3481_s2, 32  ;;  %p3483_p0 = scmp.lt.s32.totalorder %s563_s20, %s3481_s2 }
  0x93   : > { %p3478_p8 = pnand %p3476_p10, %p4237_p7  ;;  %p3484_p11 = scmp.lt.s32.totalorder %s3482_s24, %s3475_s11 }
  0x95   : > { %p3479_p2 = pneg %p3478_p8  ;;  %p3485_p13 = por %p3484_p11, %p3483_p0 }
  0x97   : > { %p3486_p4 = pnand %p3485_p13, %p3479_p2 }
  0x99   : > { %3489 = shalt.err (!%p3486_p4)
}
  0x9a   : > { %p5152_p12 = scmp.ne.s32.totalorder %s5145_s17, 0  ;;  %s572_s14 = scalar_lea.vmem [#allocation12], %s4213_s15 }
  0x9b   : > { %s579_s1 = sshll.u32 %s572_s14, 4  ;;  %s4313_s27 = sshll.u32 %s4213_s15, 4  ;;  %s580_s1 = int_to_ptr.vmem [resolvable:$true] %s579_s1 }
  0x9c   : > { %3157 = dma.hbm_to_vmem [thread:$0]  (!%p5152_p12), %s4266_s30, 16, %s563_s20, %s4176_s16  }
  0x9d   : > { %s3490_s18 = scalar_lea.hbm %s4291_s12, 16  ;;  %s3495_s19 = scalar_lea.hbm %s5151_s5, 32 }
  0x9e   : > { %p3491_p13 = scmp.ne.s32.totalorder %s4291_s12, %s3490_s18  ;;  %p3496_p9 = scmp.lt.u32.totalorder %s4291_s12, %s5151_s5 }
  0x9f   : > { %p3497_p5 = scmp.lt.u32.totalorder %s3495_s19, %s3490_s18  ;;  %p3499_p10 = scmp.lt.u32.totalorder %s3490_s18, %s4291_s12 }
  0xa0   : > { %p3493_p3 = pnand %p3491_p13, %p4237_p7 }
  0xa1   : > { %p3498_p6 = por %p3497_p5, %p3496_p9 }
  0xa2   : > { %p3494_p1 = pneg %p3493_p3 }
  0xa3   : > { %p3500_p8 = por %p3499_p10, %p3498_p6 }
  0xa5   : > { %p3501_p2 = pnand %p3500_p8, %p3494_p1 }
  0xa7   : > { %3504 = shalt.err (!%p3501_p2)
}
  0xa8   : > { %s3505_s30 = scalar_lea.vmem %s580_s1, 16  ;;  %s3960_s20 = smov [#allocation12]  }
  0xa9   : > { %p3506_p0 = scmp.ne.s32.totalorder %s580_s1, %s3505_s30  ;;  %s3510_s2 = sshll.u32 %s3960_s20, 4  ;;  %s3511_s2 = int_to_ptr.vmem [resolvable:$false] %s3510_s2 }
  0xaa   : > { %s3512_s24 = scalar_lea.vmem %s3511_s2, 32  ;;  %p3513_p13 = scmp.lt.s32.totalorder %s580_s1, %s3511_s2 }
  0xab   : > { %p3508_p11 = pnand %p3506_p0, %p4237_p7  ;;  %p3514_p3 = scmp.lt.s32.totalorder %s3512_s24, %s3505_s30 }
  0xad   : > { %p3509_p4 = pneg %p3508_p11  ;;  %p3515_p12 = por %p3514_p3, %p3513_p13 }
  0xaf   : > { %p3516_p5 = pnand %p3515_p12, %p3509_p4 }
  0xb1   : > { %3519 = shalt.err (!%p3516_p5)
}
  0xb2   : > { %p5153_p9 = scmp.ne.s32.totalorder %s5145_s17, 0  ;;  %s4334_s14 = sshll.u32 %s3944_s26, 8 }
  0xb3   : > { %s590_s18 = scalar_lea.vmem [#allocation13], %s4313_s27  ;;  %s5154_s6 = sld [smem:[#allocation48_spill]] }
  0xb4   : > { %3160 = dma.hbm_to_vmem [thread:$0]  (!%p5153_p9), %s4291_s12, 16, %s580_s1, %s4176_s16  }
  0xb5   : > { %s597_s22 = sshll.u32 %s590_s18, 4  ;;  %s4343_s22 = int_to_ptr.vmem [resolvable:$true] %s597_s22 }
  0xb9   : > { %s4341_s11 = scalar_lea.hbm %s5154_s6, %s4334_s14  ;;  %s3525_s30 = scalar_lea.hbm %s5154_s6, 512 }
  0xba   : > { %s3520_s29 = scalar_lea.hbm %s4341_s11, 256  ;;  %p3526_p10 = scmp.lt.u32.totalorder %s4341_s11, %s5154_s6 }
  0xbb   : > { %p3521_p12 = scmp.ne.s32.totalorder %s4341_s11, %s3520_s29  ;;  %p3527_p8 = scmp.lt.u32.totalorder %s3525_s30, %s3520_s29 }
  0xbc   : > { %p3529_p0 = scmp.lt.u32.totalorder %s3520_s29, %s4341_s11 }
  0xbd   : > { %p3523_p1 = pnand %p3521_p12, %p4237_p7  ;;  %p3528_p2 = por %p3527_p8, %p3526_p10 }
  0xbf   : > { %p3524_p6 = pneg %p3523_p1  ;;  %p3530_p11 = por %p3529_p0, %p3528_p2 }
  0xc1   : > { %p3531_p4 = pnand %p3530_p11, %p3524_p6 }
  0xc3   : > { %3534 = shalt.err (!%p3531_p4)
}
  0xc4   : > { %s3535_s24 = scalar_lea.vmem %s4343_s22, 256  ;;  %s3961_s18 = smov [#allocation13]  }
  0xc5   : > { %p3536_p13 = scmp.ne.s32.totalorder %s4343_s22, %s3535_s24  ;;  %s3540_s0 = sshll.u32 %s3961_s18, 4  ;;  %s3541_s0 = int_to_ptr.vmem [resolvable:$false] %s3540_s0 }
  0xc6   : > { %s3542_s19 = scalar_lea.vmem %s3541_s0, 512  ;;  %p3543_p12 = scmp.lt.s32.totalorder %s4343_s22, %s3541_s0 }
  0xc7   : > { %p3538_p3 = pnand %p3536_p13, %p4237_p7  ;;  %p3544_p1 = scmp.lt.s32.totalorder %s3542_s19, %s3535_s24 }
  0xc9   : > { %p3539_p5 = pneg %p3538_p3  ;;  %p3545_p10 = por %p3544_p1, %p3543_p12 }
  0xcb   : > { %p3546_p8 = pnand %p3545_p10, %p3539_p5 }
  0xcd   : > { %3549 = shalt.err (!%p3546_p8)
}
  0xce   : > { %s5095_s29 = smov 64   ;;  %s5099_s12 = smov 4  }
  0xcf   : > { %3163 = dma.hbm_to_vmem [thread:$0]  (!%p5153_p9), %s4341_s11, 256, %s4343_s22, %s4176_s16, %s5095_s29, %s5095_s29, %s5099_s12  }
  0xd0   : > { %s5155_s7 = sld [smem:[#allocation49_spill]]  ;;  %s611_s2 = scalar_lea.vmem [#allocation14], %s4313_s27 }
  0xd1   : > { %s618_s24 = sshll.u32 %s611_s2, 4  ;;  %s5156_s8 = sld [smem:[#allocation50_spill]]  ;;  %s4377_s24 = int_to_ptr.vmem [resolvable:$true] %s618_s24 }
  0xd6   : > { %s4374_s20 = scalar_lea.hbm %s5155_s7, %s4334_s14  ;;  %s3555_s1 = scalar_lea.hbm %s5155_s7, 512 }
  0xd7   : > { %s4383_s19 = scalar_lea.hbm %s5156_s8, %s4334_s14  ;;  %s3550_s3 = scalar_lea.hbm %s4374_s20, 256 }
  0xd8   : > { %p3551_p6 = scmp.ne.s32.totalorder %s4374_s20, %s3550_s3  ;;  %p3556_p11 = scmp.lt.u32.totalorder %s4374_s20, %s5155_s7 }
  0xd9   : > { %p3557_p4 = scmp.lt.u32.totalorder %s3555_s1, %s3550_s3  ;;  %p3559_p3 = scmp.lt.u32.totalorder %s3550_s3, %s4374_s20 }
  0xda   : > { %p3553_p2 = pnand %p3551_p6, %p4237_p7 }
  0xdb   : > { %p3558_p13 = por %p3557_p4, %p3556_p11 }
  0xdc   : > { %p3554_p0 = pneg %p3553_p2 }
  0xdd   : > { %p3560_p5 = por %p3559_p3, %p3558_p13 }
  0xdf   : > { %p3561_p12 = pnand %p3560_p5, %p3554_p0 }
  0xe1   : > { %3564 = shalt.err (!%p3561_p12)
}
  0xe2   : > { %s3565_s2 = scalar_lea.vmem %s4377_s24, 256  ;;  %s3964_s18 = smov [#allocation14]  }
  0xe3   : > { %p3566_p1 = scmp.ne.s32.totalorder %s4377_s24, %s3565_s2  ;;  %s3570_s0 = sshll.u32 %s3964_s18, 4  ;;  %s3571_s0 = int_to_ptr.vmem [resolvable:$false] %s3570_s0 }
  0xe4   : > { %s3572_s29 = scalar_lea.vmem %s3571_s0, 512  ;;  %p3573_p6 = scmp.lt.s32.totalorder %s4377_s24, %s3571_s0 }
  0xe5   : > { %p3568_p10 = pnand %p3566_p1, %p4237_p7  ;;  %p3574_p2 = scmp.lt.s32.totalorder %s3572_s29, %s3565_s2 }
  0xe7   : > { %p3569_p8 = pneg %p3568_p10  ;;  %p3575_p11 = por %p3574_p2, %p3573_p6 }
  0xe9   : > { %p3576_p4 = pnand %p3575_p11, %p3569_p8 }
  0xeb   : > { %3579 = shalt.err (!%p3576_p4)
}
  0xec   : > { %s5157_s3 = smov 64   ;;  %s632_s22 = scalar_lea.vmem [#allocation15], %s4313_s27 }
  0xed   : > { %3166 = dma.hbm_to_vmem [thread:$0]  (!%p5153_p9), %s4374_s20, 256, %s4377_s24, %s4176_s16, %s5157_s3, %s5157_s3, %s5099_s12  }
  0xee   : > { %s639_s11 = sshll.u32 %s632_s22, 4  ;;  %s5158_s9 = sld [smem:[#allocation51_spill]]  ;;  %s4411_s11 = int_to_ptr.vmem [resolvable:$true] %s639_s11 }
  0xef   : > { %s3580_s18 = scalar_lea.hbm %s4383_s19, 256  ;;  %s3585_s4 = scalar_lea.hbm %s5156_s8, 512 }
  0xf0   : > { %p3581_p0 = scmp.ne.s32.totalorder %s4383_s19, %s3580_s18  ;;  %p3586_p5 = scmp.lt.u32.totalorder %s4383_s19, %s5156_s8 }
  0xf1   : > { %p3587_p12 = scmp.lt.u32.totalorder %s3585_s4, %s3580_s18  ;;  %p3589_p10 = scmp.lt.u32.totalorder %s3580_s18, %s4383_s19 }
  0xf2   : > { %p3583_p13 = pnand %p3581_p0, %p4237_p7 }
  0xf3   : > { %p3588_p1 = por %p3587_p12, %p3586_p5 }
  0xf4   : > { %s4417_s2 = scalar_lea.hbm %s5158_s9, %s4216_s13  ;;  %p3584_p3 = pneg %p3583_p13 }
  0xf5   : > { %p3590_p8 = por %p3589_p10, %p3588_p1 }
  0xf7   : > { %p3591_p6 = pnand %p3590_p8, %p3584_p3 }
  0xf9   : > { %3594 = shalt.err (!%p3591_p6)
}
  0xfa   : > { %s3595_s24 = scalar_lea.vmem %s4411_s11, 256  ;;  %s3965_s22 = smov [#allocation15]  }
  0xfb   : > { %p3596_p2 = scmp.ne.s32.totalorder %s4411_s11, %s3595_s24  ;;  %s3600_s1 = sshll.u32 %s3965_s22, 4  ;;  %s3601_s1 = int_to_ptr.vmem [resolvable:$false] %s3600_s1 }
  0xfc   : > { %s3602_s5 = scalar_lea.vmem %s3601_s1, 512  ;;  %p3603_p0 = scmp.lt.s32.totalorder %s4411_s11, %s3601_s1 }
  0xfd   : > { %p3598_p11 = pnand %p3596_p2, %p4237_p7  ;;  %p3604_p13 = scmp.lt.s32.totalorder %s3602_s5, %s3595_s24 }
  0xff   : > { %p3599_p4 = pneg %p3598_p11  ;;  %p3605_p5 = por %p3604_p13, %p3603_p0 }
 0x101   : > { %p3606_p12 = pnand %p3605_p5, %p3599_p4 }
 0x103   : > { %3609 = shalt.err (!%p3606_p12)
}
 0x104   : > { %3169 = dma.hbm_to_vmem [thread:$0]  (!%p5153_p9), %s4383_s19, 256, %s4411_s11, %s4176_s16, %s5157_s3, %s5157_s3, %s5099_s12  }
 0x105   : > { %s652_s4 = scalar_lea.vmem [#allocation16], %s4213_s15  ;;  %s5159_s10 = sld [smem:[#allocation52_spill]] }
 0x106   : > { %s659_s30 = sshll.u32 %s652_s4, 4  ;;  %s3610_s20 = scalar_lea.hbm %s4417_s2, 16  ;;  %s660_s30 = int_to_ptr.vmem [resolvable:$true] %s659_s30 }
 0x107   : > { %p3611_p3 = scmp.ne.s32.totalorder %s4417_s2, %s3610_s20  ;;  %s3615_s1 = scalar_lea.hbm %s5158_s9, 32 }
 0x108   : > { %p3616_p8 = scmp.lt.u32.totalorder %s4417_s2, %s5158_s9  ;;  %p3617_p6 = scmp.lt.u32.totalorder %s3615_s1, %s3610_s20 }
 0x109   : > { %p3613_p1 = pnand %p3611_p3, %p4237_p7  ;;  %p3619_p11 = scmp.lt.u32.totalorder %s3610_s20, %s4417_s2 }
 0x10a   : > { %p3618_p2 = por %p3617_p6, %p3616_p8 }
 0x10b   : > { %s4449_s29 = scalar_lea.hbm %s5159_s10, %s4216_s13  ;;  %p3614_p10 = pneg %p3613_p1 }
 0x10c   : > { %p3620_p4 = por %p3619_p11, %p3618_p2 }
 0x10e   : > { %p3621_p0 = pnand %p3620_p4, %p3614_p10 }
 0x110   : > { %3624 = shalt.err (!%p3621_p0)
}
 0x111   : > { %s3625_s13 = scalar_lea.vmem %s660_s30, 16  ;;  %s3966_s19 = smov [#allocation16]  }
 0x112   : > { %p3626_p13 = scmp.ne.s32.totalorder %s660_s30, %s3625_s13  ;;  %s3630_s11 = sshll.u32 %s3966_s19, 4  ;;  %s3631_s11 = int_to_ptr.vmem [resolvable:$false] %s3630_s11 }
 0x113   : > { %s3632_s4 = scalar_lea.vmem %s3631_s11, 32  ;;  %p3633_p3 = scmp.lt.s32.totalorder %s660_s30, %s3631_s11 }
 0x114   : > { %p3628_p5 = pnand %p3626_p13, %p4237_p7  ;;  %p3634_p1 = scmp.lt.s32.totalorder %s3632_s4, %s3625_s13 }
 0x116   : > { %p3629_p12 = pneg %p3628_p5  ;;  %p3635_p9 = por %p3634_p1, %p3633_p3 }
 0x118   : > { %p3636_p6 = pnand %p3635_p9, %p3629_p12 }
 0x11a   : > { %3639 = shalt.err (!%p3636_p6)
}
 0x11b   : > { %p5160_p8 = scmp.ne.s32.totalorder %s5145_s17, 0  ;;  %s669_s6 = scalar_lea.vmem [#allocation17], %s4213_s15 }
 0x11c   : > { %s676_s18 = sshll.u32 %s669_s6, 4  ;;  %s3640_s0 = scalar_lea.hbm %s4449_s29, 16  ;;  %s677_s18 = int_to_ptr.vmem [resolvable:$true] %s676_s18 }
 0x11d   : > { %3172 = dma.hbm_to_vmem [thread:$0]  (!%p5160_p8), %s4417_s2, 16, %s660_s30, %s4176_s16  }
 0x11e   : > { %p3641_p10 = scmp.ne.s32.totalorder %s4449_s29, %s3640_s0  ;;  %s3645_s22 = scalar_lea.hbm %s5159_s10, 32 }
 0x11f   : > { %p3646_p11 = scmp.lt.u32.totalorder %s4449_s29, %s5159_s10  ;;  %p3647_p4 = scmp.lt.u32.totalorder %s3645_s22, %s3640_s0 }
 0x120   : > { %p3643_p2 = pnand %p3641_p10, %p4237_p7  ;;  %p3649_p13 = scmp.lt.u32.totalorder %s3640_s0, %s4449_s29 }
 0x121   : > { %p3648_p0 = por %p3647_p4, %p3646_p11 }
 0x122   : > { %p3644_p9 = pneg %p3643_p2 }
 0x123   : > { %p3650_p5 = por %p3649_p13, %p3648_p0 }
 0x125   : > { %p3651_p12 = pnand %p3650_p5, %p3644_p9 }
 0x127   : > { %3654 = shalt.err (!%p3651_p12)
}
 0x128   : > { %s3655_s2 = scalar_lea.vmem %s677_s18, 16  ;;  %s3967_s30 = smov [#allocation17]  }
 0x129   : > { %p3656_p3 = scmp.ne.s32.totalorder %s677_s18, %s3655_s2  ;;  %s3660_s13 = sshll.u32 %s3967_s30, 4  ;;  %s3661_s13 = int_to_ptr.vmem [resolvable:$false] %s3660_s13 }
 0x12a   : > { %s3662_s19 = scalar_lea.vmem %s3661_s13, 32  ;;  %p3663_p10 = scmp.lt.s32.totalorder %s677_s18, %s3661_s13 }
 0x12b   : > { %p3658_p1 = pnand %p3656_p3, %p4237_p7  ;;  %p3664_p2 = scmp.lt.s32.totalorder %s3662_s19, %s3655_s2 }
 0x12d   : > { %p3659_p6 = pneg %p3658_p1  ;;  %p3665_p8 = por %p3664_p2, %p3663_p10 }
 0x12f   : > { %p3666_p4 = pnand %p3665_p8, %p3659_p6 }
 0x131   : > { %3669 = shalt.err (!%p3666_p4)
}
 0x132   : > { %p5161_p11 = scmp.ne.s32.totalorder %s5145_s17, 0  ;;  %s5162_s11 = sld [smem:[#allocation33_spill]] }
 0x133   : > { %s5163_s4 = sld [smem:[#allocation30_spill]]  ;;  %s5164_s6 = sld [smem:[#allocation31_spill]] }
 0x134   : > { %3175 = dma.hbm_to_vmem [thread:$0]  (!%p5161_p11), %s4449_s29, 16, %s677_s18, %s4176_s16  }
 0x135   : > { %s4489_s0 = sadd.s32 4294967295, %s3952_s28   ;;  %s2784_s20 = sadd.s32 4294967294, %s3952_s28  }
 0x136   : > { %p5101_p9 = scmp.eq.s32.totalorder %s4489_s0, 0  ;;  %p438_p13 = scmp.eq.s32.totalorder %s4489_s0, 3 }
 0x137   : > { %p444_p12 = scmp.eq.s32.totalorder %s2784_s20, 3  ;;  %p2785_p2 = scmp.ge.s32.totalorder %s3952_s28, 1 }
 0x138   : > { %p65_p8 = scmp.ne.s32.totalorder %s5162_s11, %s3924_s21  ;;  %p5167_p1 = scmp.ne.s32.totalorder %s3932_s23, %s5162_s11 }
 0x139   : > { %p112_p0 = scmp.ne.s32.totalorder %s5164_s6, %s5163_s4  ;;  %p451_p4 = scmp.lt.s32.totalorder %s3952_s28, 5 }
 0x13a   : > { %p4500_p5 = por %p5101_p9, %p65_p8  ;;  %p4513_p6 = por %p438_p13, %p5167_p1 }
 0x13b   : > { %p4506_p3 = por %p112_p0, %p5101_p9  ;;  %p4517_p10 = por %p444_p12, %p65_p8 }
 0x13c   : > { %s5165_s24 = scalar_select %p4500_p5, 1, 0 }
 0x13d   : > { %s5166_s29 = scalar_select %p4506_p3, 1, 0 }
 0x13e   : > { %s5168_s18 = scalar_select %p4513_p6, 1, 0 }
 0x13f   : > { %s5169_s22 = scalar_select %p4517_p10, 1, 0 }
 0x140   : > { %p4523_p5 = pnand %p2785_p2, %p451_p4  ;;  %s3968_s5 = smov [#allocation7]  }
 0x141   : > { %s464_s2 = sshll.u32 %s3968_s5, 4  ;;  %s5171_s19 = sld [smem:[#allocation53_spill]]  ;;  %s4527_s2 = int_to_ptr.vmem [resolvable:$true] %s464_s2 }
 0x142   : > { %s5170_s1 = scalar_select %p4523_p5, 1, 0 }
 0x143   : > { %p3135_p8 = pneg %p4523_p5  ;;  %s687_s6 = scalar_lea.vmem [#allocation18], %s4313_s27 }
 0x144   : > { %s694_s20 = sshll.u32 %s687_s6, 4  ;;  %s3969_s12 = smov [#allocation20]   ;;  %s4538_s20 = int_to_ptr.vmem [resolvable:$true] %s694_s20 }
 0x145   : > { %p4542_p0 = pnand %p3135_p8, %p5101_p9  ;;  %s4546_s7 = sshll.u32 %s3969_s12, 4  ;;  %s4574_s7 = int_to_ptr.vmem [resolvable:$true] %s4546_s7 }
 0x147   : > { %s5172_s11 = smov %s5171_s19  ;;  %s4533_s4 = scalar_lea.hbm %s5171_s19, %s4334_s14 }
 0x148   : > { %s5173_s5 = scalar_select %p4542_p0, 1, 0 }
 0x149   : > { %s3670_s14 = scalar_lea.hbm %s4533_s4, 256  ;;  %s3675_s27 = scalar_lea.hbm %s5172_s11, 512 }
 0x14a   : > { %p3671_p13 = scmp.ne.s32.totalorder %s4533_s4, %s3670_s14  ;;  %p3676_p2 = scmp.lt.u32.totalorder %s4533_s4, %s5172_s11 }
 0x14b   : > { %p3677_p4 = scmp.lt.u32.totalorder %s3675_s27, %s3670_s14  ;;  %p3679_p9 = scmp.lt.u32.totalorder %s3670_s14, %s4533_s4 }
 0x14c   : > { %p3673_p12 = pnand %p3671_p13, %p4237_p7 }
 0x14d   : > { %p3678_p8 = por %p3677_p4, %p3676_p2 }
 0x14e   : > { %p3674_p1 = pneg %p3673_p12 }
 0x14f   : > { %p3680_p10 = por %p3679_p9, %p3678_p8 }
 0x151   : > { %p3681_p6 = pnand %p3680_p10, %p3674_p1 }
 0x153   : > { %3684 = shalt.err (!%p3681_p6)
}
 0x154   : > { %s3685_s12 = scalar_lea.vmem %s4538_s20, 256  ;;  %s3970_s30 = smov [#allocation18]  }
 0x155   : > { %p3686_p13 = scmp.ne.s32.totalorder %s4538_s20, %s3685_s12  ;;  %s3690_s13 = sshll.u32 %s3970_s30, 4  ;;  %s3691_s13 = int_to_ptr.vmem [resolvable:$false] %s3690_s13 }
 0x156   : > { %s3692_s19 = scalar_lea.vmem %s3691_s13, 512  ;;  %p3693_p5 = scmp.lt.s32.totalorder %s4538_s20, %s3691_s13 }
 0x157   : > { %p3688_p12 = pnand %p3686_p13, %p4237_p7  ;;  %p3694_p0 = scmp.lt.s32.totalorder %s3692_s19, %s3685_s12 }
 0x159   : > { %p3689_p3 = pneg %p3688_p12  ;;  %p3695_p2 = por %p3694_p0, %p3693_p5 }
 0x15b   : > { %p3696_p4 = pnand %p3695_p2, %p3689_p3 }
 0x15d   : > { %3699 = shalt.err (!%p3696_p4)
}
 0x15e   : > { %s5174_s14 = smov 4   ;;  %s5175_s30 = sld [smem:[#allocation43_spill]] }
 0x15f   : > { %3178 = dma.hbm_to_vmem [thread:$0]  (!%p5161_p11), %s4533_s4, 256, %s4538_s20, %s4176_s16, %s5157_s3, %s5157_s3, %s5174_s14  }
 0x160   : > { %p5176_p5 = scmp.ne.s32.totalorder %s5173_s5, 0 }
 0x162   : > { %p4584_p3 = pneg %p5176_p5 }
 0x164   : > { %s3700_s12 = scalar_lea.hbm %s5175_s30, 128 }
 0x165   : > { %p3701_p9 = scmp.ne.s32.totalorder %s5175_s30, %s3700_s12  ;;  %p3707_p0 = scmp.lt.u32.totalorder %s3700_s12, %s5175_s30 }
 0x167   : > { %p3703_p6 = pnand %p4584_p3, %p3701_p9 }
 0x169   : > { %p3704_p10 = pneg %p3703_p6 }
 0x16b   : > { %p3709_p1 = pnand %p3707_p0, %p3704_p10 }
 0x16d   : > { %3712 = shalt.err (!%p3709_p1)
}
 0x16e   : > { %s3713_s27 = scalar_lea.vmem %s4527_s2, 128  ;;  %p3721_p2 = scmp.lt.s32.totalorder %s4527_s2, %s4527_s2 }
 0x16f   : > { %p3714_p8 = scmp.ne.s32.totalorder %s4527_s2, %s3713_s27  ;;  %p3722_p4 = scmp.lt.s32.totalorder %s3713_s27, %s3713_s27 }
 0x171   : > { %p3716_p13 = pnand %p3714_p8, %p4584_p3  ;;  %p3723_p9 = por %p3722_p4, %p3721_p2 }
 0x173   : > { %p3717_p12 = pneg %p3716_p13 }
 0x175   : > { %p3724_p6 = pnand %p3723_p9, %p3717_p12 }
 0x177   : > { %3727 = shalt.err (!%p3724_p6)
}
 0x178   : > { %3138 = dma.hbm_to_vmem [thread:$0]  (!%p5176_p5), %s5175_s30, 128, %s4527_s2, [#allocation8]  }
 0x179   : > { %s5178_s4 = sld [smem:[#allocation55_spill]] }
 0x17f   : > { %s3728_s20 = scalar_lea.hbm %s5178_s4, 16 }
 0x180   : > { %p3729_p10 = scmp.ne.s32.totalorder %s5178_s4, %s3728_s20  ;;  %p3735_p8 = scmp.lt.u32.totalorder %s3728_s20, %s5178_s4 }
 0x182   : > { %p3731_p0 = pnand %p3729_p10, %p4584_p3 }
 0x184   : > { %p3732_p1 = pneg %p3731_p0 }
 0x186   : > { %p3737_p13 = pnand %p3735_p8, %p3732_p1 }
 0x188   : > { %3740 = shalt.err (!%p3737_p13)
}
 0x189   : > { %s3741_s2 = scalar_lea.vmem %s4574_s7, 16  ;;  %s3748_s9 = scalar_lea.vmem %s4574_s7, 32 }
 0x18a   : > { %p3742_p12 = scmp.ne.s32.totalorder %s4574_s7, %s3741_s2  ;;  %p3749_p9 = scmp.lt.s32.totalorder %s4574_s7, %s4574_s7 }
 0x18b   : > { %p3750_p6 = scmp.lt.s32.totalorder %s3748_s9, %s3741_s2 }
 0x18c   : > { %p3744_p2 = pnand %p3742_p12, %p4584_p3 }
 0x18d   : > { %p3751_p10 = por %p3750_p6, %p3749_p9 }
 0x18e   : > { %p3745_p4 = pneg %p3744_p2 }
 0x190   : > { %p3752_p0 = pnand %p3751_p10, %p3745_p4 }
 0x192   : > { %3755 = shalt.err (!%p3752_p0)
}
 0x193   : > { %3141 = dma.hbm_to_vmem [thread:$0]  (!%p5176_p5), %s5178_s4, 16, %s4574_s7, [#allocation8]  }
 0x194   : > { %s2811_s6 = sshll.u32 %s4213_s15, 6  ;;  %s3971_s12 = smov [#allocation21]  }
 0x195   : > { %s486_s13 = sshll.u32 %s3971_s12, 4  ;;  %s2888_s19 = sshll.u32 %s3944_s26, 10  ;;  %s487_s13 = int_to_ptr.vmem [resolvable:$true] %s486_s13 }
 0x196   : > { %s5179_s2 = sld [smem:[#allocation56_spill]] }
 0x19c   : > { %s3756_s9 = scalar_lea.hbm %s5179_s2, 16 }
 0x19d   : > { %p3757_p1 = scmp.ne.s32.totalorder %s5179_s2, %s3756_s9  ;;  %p3763_p12 = scmp.lt.u32.totalorder %s3756_s9, %s5179_s2 }
 0x19f   : > { %p3759_p8 = pnand %p3757_p1, %p4584_p3 }
 0x1a1   : > { %p3760_p13 = pneg %p3759_p8 }
 0x1a3   : > { %p3765_p2 = pnand %p3763_p12, %p3760_p13 }
 0x1a5   : > { %3768 = shalt.err (!%p3765_p2)
}
 0x1a6   : > { %s3769_s7 = scalar_lea.vmem %s487_s13, 16  ;;  %s3776_s15 = scalar_lea.vmem %s487_s13, 32 }
 0x1a7   : > { %p3770_p4 = scmp.ne.s32.totalorder %s487_s13, %s3769_s7  ;;  %p3777_p10 = scmp.lt.s32.totalorder %s487_s13, %s487_s13 }
 0x1a8   : > { %p3778_p0 = scmp.lt.s32.totalorder %s3776_s15, %s3769_s7 }
 0x1a9   : > { %p3772_p9 = pnand %p3770_p4, %p4584_p3 }
 0x1aa   : > { %p3779_p11 = por %p3778_p0, %p3777_p10 }
 0x1ab   : > { %p3773_p6 = pneg %p3772_p9 }
 0x1ad   : > { %p3780_p7 = pnand %p3779_p11, %p3773_p6 }
 0x1af   : > { %3783 = shalt.err (!%p3780_p7)
}
 0x1b0   : > { %3144 = dma.hbm_to_vmem [thread:$0]  (!%p5176_p5), %s5179_s2, 16, %s487_s13, [#allocation22]  }
 0x1b1   : > { %s5180_s27 = sld [smem:[#allocation54_spill]]  ;;  %s708_s8 = scalar_lea.vmem [#allocation19], %s2811_s6 }
 0x1b2   : > { %s715_s11 = sshll.u32 %s708_s8, 4  ;;  %p5182_p11 = scmp.ne.s32.totalorder %s5148_s25, 0  ;;  %s4654_s11 = int_to_ptr.vmem [resolvable:$true] %s715_s11 }
 0x1b7   : > { %s5181_s9 = smov %s5180_s27  ;;  %s4652_s10 = scalar_lea.hbm %s5180_s27, %s2888_s19 }
 0x1b8   : > { %s3784_s7 = scalar_lea.hbm %s4652_s10, 1024  ;;  %s3789_s15 = scalar_lea.hbm %s5181_s9, 2048 }
 0x1b9   : > { %p3785_p7 = scmp.ne.s32.totalorder %s4652_s10, %s3784_s7  ;;  %p3790_p5 = scmp.lt.u32.totalorder %s4652_s10, %s5181_s9 }
 0x1ba   : > { %p3791_p8 = scmp.lt.u32.totalorder %s3789_s15, %s3784_s7  ;;  %p3793_p12 = scmp.lt.u32.totalorder %s3784_s7, %s4652_s10 }
 0x1bb   : > { %p3787_p3 = pnand %p3785_p7, %p5182_p11 }
 0x1bc   : > { %p3792_p13 = por %p3791_p8, %p3790_p5 }
 0x1bd   : > { %p3788_p1 = pneg %p3787_p3 }
 0x1be   : > { %p3794_p2 = por %p3793_p12, %p3792_p13 }
 0x1c0   : > { %p3795_p4 = pnand %p3794_p2, %p3788_p1 }
 0x1c2   : > { %3798 = shalt.err (!%p3795_p4)
}
 0x1c3   : > { %s3799_s6 = scalar_lea.vmem %s4654_s11, 1024  ;;  %s3972_s30 = smov [#allocation19]  }
 0x1c4   : > { %p3800_p9 = scmp.ne.s32.totalorder %s4654_s11, %s3799_s6  ;;  %s3804_s12 = sshll.u32 %s3972_s30, 4  ;;  %s3805_s12 = int_to_ptr.vmem [resolvable:$false] %s3804_s12 }
 0x1c5   : > { %s3806_s20 = scalar_lea.vmem %s3805_s12, 2048  ;;  %p3807_p0 = scmp.lt.s32.totalorder %s4654_s11, %s3805_s12 }
 0x1c6   : > { %p3802_p6 = pnand %p3800_p9, %p5182_p11  ;;  %p3808_p7 = scmp.lt.s32.totalorder %s3806_s20, %s3799_s6 }
 0x1c8   : > { %p3803_p10 = pneg %p3802_p6  ;;  %p3809_p3 = por %p3808_p7, %p3807_p0 }
 0x1ca   : > { %p3810_p5 = pnand %p3809_p3, %p3803_p10 }
 0x1cc   : > { %3813 = shalt.err (!%p3810_p5)
}
 0x1cd   : > { %p5183_p1 = scmp.ne.s32.totalorder %s5145_s17, 0  ;;  %p5184_p11 = scmp.ne.s32.totalorder %s5170_s1, 0 }
 0x1ce   : > { %s5185_s25 = sld [smem:[#allocation33_spill]] (!%p5184_p11)  ;;  %s729_s27 = sand.u32 (!%p5184_p11), 1, %s4489_s0  }
 0x1cf   : > { %3181 = dma.hbm_to_vmem [thread:$0]  (!%p5183_p1), %s4652_s10, 1024, %s4654_s11, %s4176_s16, %s5157_s3, %s5157_s3, %s5174_s14  }
 0x1d0   : > { %727 = sbr.rel (%p5184_p11) target bundleno = 4898 (0x1322), region = 80  ;;  %s730_s17 = scalar_lea.sflag (!%p5184_p11), [#allocation5], %s729_s27 }
 0x1d1   : > { %p5186_p8 = scmp.ne.s32.totalorder (!%p5184_p11), %s5165_s24, 0 }
 0x1d4   : > { %s731_s8 = sand.u32 (!%p5184_p11), 1, %s5185_s25  }
 0x1d5   : > { %s4687_s7 = sshll.u32 (!%p5184_p11), %s731_s8, 4 }
 0x1d6   : > { %s733_s5 = scalar_lea.vmem (!%p5184_p11), [#allocation4], %s4687_s7 }
 0x1d7   : > { %3887 = dma.done.wait (%p5186_p8), %s730_s17, 256  }
 0x1d8   : > { %3889 = vsyncadd (%p5186_p8), %s730_s17, 4294967040  ;;  %p5187_p13 = scmp.eq.s32.totalorder %s4489_s0, 0 }
 0x1da   : > { %3891 = dma.done.wait (%p5187_p13), [#allocation8], 128   ;;  %p5188_p12 = pmov %p5187_p13 }
 0x1db   : > { %s5189_s16 = sld [smem:[#allocation31_spill]]  ;;  %p5190_p2 = scmp.ne.s32.totalorder %s5166_s29, 0 }
 0x1dc   : > { %3893 = vsyncadd (%p5188_p12), [#allocation8], 4294967168 }
 0x1e1   : > { %s4699_s3 = sand.u32 1, %s5189_s16  }
 0x1e2   : > { %s745_s1 = scalar_lea.vmem [#allocation9], %s4699_s3 }
 0x1e3   : > { %3895 = dma.done.wait (%p5190_p2), %s730_s17, 2144  }
 0x1e4   : > { %3897 = vsyncadd (%p5190_p2), %s730_s17, 4294965152  ;;  %s4707_s24 = sshll.u32 %s4699_s3, 4  ;;  %s2821_s14 = sshll.u32 %s4699_s3, 6 }
 0x1e5   : > { %s753_s10 = scalar_lea.vmem [#allocation10], %s4699_s3  ;;  %s761_s11 = scalar_lea.vmem [#allocation11], %s4699_s3 }
 0x1e6   : > { %s769_s13 = scalar_lea.vmem [#allocation12], %s4699_s3  ;;  %s778_s29 = scalar_lea.vmem [#allocation13], %s4707_s24 }
 0x1e7   : > { %s787_s15 = scalar_lea.vmem [#allocation14], %s4707_s24  ;;  %s796_s23 = scalar_lea.vmem [#allocation15], %s4707_s24 }
 0x1e8   : > { %s804_s19 = scalar_lea.vmem [#allocation16], %s4699_s3  ;;  %s812_s6 = scalar_lea.vmem [#allocation17], %s4699_s3 }
 0x1e9   : > { %s821_s30 = scalar_lea.vmem [#allocation18], %s4707_s24  ;;  %s4719_s12 = scalar_lea.vmem [#allocation19], %s2821_s14 }
 0x1ea   : > { %p5191_p4 = pmov %p5188_p12 }
 0x1ec   : > { %3899 = dma.done.wait (%p5191_p4), [#allocation8], 16   ;;  %p5192_p9 = pmov %p5191_p4 }
 0x1ed   : > { %p5193_p6 = pmov %p5191_p4 }
 0x1ee   : > { %3901 = vsyncadd (%p5192_p9), [#allocation8], 4294967280 }
 0x1ef   : > { %3903 = dma.done.wait (%p5193_p6), [#allocation22], 16   ;;  %p5194_p10 = pmov %p5191_p4 }
 0x1f0   : > { %s4730_s20 = scalar_lea.vmem [#allocation23], %s4687_s7  ;;  %s5195_s25 = sld [smem:[#allocation35_spill]] }
 0x1f1   : > { %3905 = vsyncadd (%p5194_p10), [#allocation22], 4294967280 }
 0x1f6   : > { %p2825_p0 = scmp.ne.s32.totalorder %s5195_s25, 0 }
 0x1f7   : > { %v941_v0 = vld [vmem:[#allocation7] sm:$0xff] (!%p2825_p0)  ;;  %vm942_vm0 = vcmask (!%p2825_p0), 261120  }
 0x1f8   : > { %940 = sbr.rel (%p2825_p0) target bundleno = 511 (0x1ff), region = 144  ;;  %943 = vst.msk [vmem:[%s4730_s20] sm:$0xff] (!%p2825_p0), %vm942_vm0, %v941_v0  ;;  %944 = vst.msk [vmem:[%s4730_s20 + $0x8] sm:$0xff] (!%p2825_p0), %vm942_vm0, %v941_v0 }
 0x1ff PF: > { %v947_v1 = vld [vmem:[%s733_s5] sm:$0xff]  ;;  %vm951_vm1 = vcmask 261120   ;;  %v948_v2 = vld [vmem:[%s733_s5 + $0x8] sm:$0xff]  ;;  %v4740_v3 = vld [vmem:[%s4730_s20] sm:$0xff]  ;;  %v3973_v30 = vmov 0.0   ;;  %vm3974_vm2 = vmmov 0  }
 0x200   : > { %v952_v4 = vsel %vm951_vm1, %v947_v1, 0.0  ;;  %v955_v5 = vsel %vm951_vm1, %v948_v2, 0.0  ;;  %v4745_v6 = vld [vmem:[%s4730_s20 + $0x8] sm:$0xff]  ;;  %v997_v7 = vsel %vm951_vm1, %v4740_v3, 0.0  ;;  %v3302_v29 = vld [vmem:[%s778_s29] sm:$0xff]   ;;  %2949 = vmatprep.subr.bf16.mxu1 %v3973_v30  ;;  %2977 = vmatprep.subr.bf16.mxu0 %v3973_v30  ;;  %v3303_v31 = vld [vmem:[%s778_s29 + $0x8] sm:$0xff]  }
 0x201   : > { %953 = vadd.xlane.f32.xlu0 %v952_v4  ;;  %956 = vadd.xlane.f32.xlu1 %v955_v5  ;;  %v1000_v8 = vsel %vm951_vm1, %v4745_v6, 0.0  ;;  %v3304_v32 = vld [vmem:[%s787_s15] sm:$0xff]   ;;  %vm1195_vm3 = vcmask 64512   ;;  %vm1288_vm4 = vcmask 130048   ;;  %s3975_s0 = smov 96   ;;  %s3976_s27 = smov 120  }
 0x202   : > { %2950 = vmatpush3.bf16.msra.mxu1 %v3302_v29  ;;  %2953 = vmatprep.mubr.msk.bf16.mxu1 %vm3974_vm2, %v3973_v30  ;;  %v2826_v46 = vld [vmem:[%s745_s1] ss:$0 sm:$0xff]  ;;  %s3977_s7 = smov 88   ;;  %s3978_s17 = smov 112   ;;  %vm1637_vm5 = vcmask 130112   ;;  %vm1866_vm6 = vcmask 195712  }
 0x203   : > { %2951 = vmatprep.subr.bf16.mxu1 %v3973_v30  ;;  %2979 = vmatprep.mubr.msk.bf16.mxu0 %vm3974_vm2, %v3973_v30  ;;  %v2827_v48 = vld [vmem:[%s753_s10] ss:$0 sm:$0xff]  ;;  %s3979_s5 = smov 80   ;;  %s3980_s16 = smov 104   ;;  %vm2095_vm7 = vcmask 261312  }
 0x204   : > { %v2828_v51 = vld [vmem:[%s761_s11] ss:$0 sm:$0xff]  ;;  %s3981_s1 = smov 72   ;;  %s3982_s14 = smov 8  }
 0x205   : > { %998 = vadd.xlane.f32.xlu0 %v997_v7  ;;  %1001 = vadd.xlane.f32.xlu1 %v1000_v8  ;;  %v2829_v56 = vld [vmem:[%s769_s13] ss:$0 sm:$0xff]  ;;  %s3983_s10 = smov 16   ;;  %s3984_s11 = smov 24  }
 0x206   : > { %2952 = vmatpush3.bf16.msra.mxu1 %v3303_v31  ;;  %s5196_s3 = sld [smem:[#allocation35_spill]] }
 0x207   : > { %2957 = vmatprep.subr.bf16.mxu1 %v3304_v32 }
 0x20c   : > { %p2874_p7 = scmp.ne.s32.totalorder %s5196_s3, 1 }
 0x28e   : > { %v954_v9 = vpop.xlane.xlu0 %953  ;;  %v957_v10 = vpop.xlane.xlu1 %956 }
 0x28f   : > { %v959_v11 = vmul.f32 0.03125, %v954_v9  ;;  %v960_v12 = vmul.f32 0.03125, %v957_v10 }
 0x291   : > { %v961_v13 = vsub.f32 %v947_v1, %v959_v11  ;;  %v962_v14 = vsub.f32 %v948_v2, %v960_v12  ;;  %v3305_v2 = vld [vmem:[%s787_s15 + $0x8] sm:$0xff]  }
 0x292   : > { %v999_v15 = vpop.xlane.xlu0 %998  ;;  %v1002_v16 = vpop.xlane.xlu1 %1001 }
 0x293   : > { %v1003_v17 = vmul.f32 0.03125, %v999_v15  ;;  %v1004_v18 = vmul.f32 0.03125, %v1002_v16  ;;  %v963_v19 = vmul.f32 %v961_v13, %v961_v13  ;;  %v964_v20 = vmul.f32 %v962_v14, %v962_v14 }
 0x295   : > { %v1005_v21 = vsub.f32 %v4740_v3, %v1003_v17  ;;  %v1006_v22 = vsub.f32 %v4745_v6, %v1004_v18  ;;  %v965_v23 = vsel %vm951_vm1, %v963_v19, 0.0  ;;  %v968_v24 = vsel %vm951_vm1, %v964_v20, 0.0 }
 0x296   : > { %966 = vadd.xlane.f32.xlu0 %v965_v23 }
 0x297   : > { %v1007_v25 = vmul.f32 %v1005_v21, %v1005_v21  ;;  %v1008_v26 = vmul.f32 %v1006_v22, %v1006_v22 }
 0x299   : > { %v1009_v27 = vsel %vm951_vm1, %v1007_v25, 0.0  ;;  %v1012_v28 = vsel %vm951_vm1, %v1008_v26, 0.0 }
 0x29a   : > { %969 = vadd.xlane.f32.xlu0 %v968_v24  ;;  %1010 = vadd.xlane.f32.xlu1 %v1009_v27 }
 0x29e   : > { %1013 = vadd.xlane.f32.xlu1 %v1012_v28 }
 0x323   : > { %v967_v33 = vpop.xlane.xlu0 %966 }
 0x324   : > { %v971_v34 = vmul.f32 0.03125, %v967_v33 }
 0x326   : > { %v973_v35 = vadd.f32 1e-05, %v971_v34 }
 0x327   : > { %v1011_v36 = vpop.xlane.xlu1 %1010  ;;  %v970_v37 = vpop.xlane.xlu0 %969 }
 0x328   : > { %3318 = vrsqrt.f32 %v973_v35  ;;  %v1015_v38 = vmul.f32 0.03125, %v1011_v36  ;;  %v972_v39 = vmul.f32 0.03125, %v970_v37 }
 0x32a   : > { %v1017_v40 = vadd.f32 1e-05, %v1015_v38  ;;  %v974_v41 = vadd.f32 1e-05, %v972_v39 }
 0x32b   : > { %v1014_v42 = vpop.xlane.xlu1 %1013 }
 0x32c   : > { %3320 = vrsqrt.f32 %v1017_v40  ;;  %v1016_v43 = vmul.f32 0.03125, %v1014_v42 }
 0x32d   : > { %3322 = vrsqrt.f32 %v974_v41 }
 0x32e   : > { %v1018_v44 = vadd.f32 1e-05, %v1016_v43 }
 0x330   : > { %3324 = vrsqrt.f32 %v1018_v44 }
 0x332   : > { %v3319_v45 = vpop.eup %3318 }
 0x333   : > { %v977_v47 = vmul.f32 %v3319_v45, %v961_v13 }
 0x335   : > { %v985_v49 = vmul.f32 %v2826_v46, %v977_v47 }
 0x336   : > { %v3321_v50 = vpop.eup %3320 }
 0x337   : > { %v3323_v52 = vpop.eup %3322  ;;  %v993_v53 = vadd.f32 %v2827_v48, %v985_v49  ;;  %v1021_v54 = vmul.f32 %v3321_v50, %v1005_v21 }
 0x338   : > { %v978_v55 = vmul.f32 %v3323_v52, %v962_v14 }
 0x339   : > { %1039 = vst.msk [vmem:[#allocation2] sm:$0xff] %vm951_vm1, %v993_v53  ;;  %v1029_v57 = vmul.f32 %v2828_v51, %v1021_v54 }
 0x33a   : > { %v3325_v58 = vpop.eup %3324  ;;  %v986_v59 = vmul.f32 %v2826_v46, %v978_v55 }
 0x33b   : > { %v1022_v60 = vmul.f32 %v3325_v58, %v1006_v22  ;;  %v1037_v61 = vadd.f32 %v2829_v56, %v1029_v57 }
 0x33c   : > { %v994_v62 = vadd.f32 %v2827_v48, %v986_v59 }
 0x33d   : > { %v1030_v63 = vmul.f32 %v2828_v51, %v1022_v60  ;;  %1041 = vst.msk [vmem:[#allocation2 + $0x8] sm:$0xff] %vm951_vm1, %v1037_v61 }
 0x33e   : > { %1040 = vst.msk [vmem:[#allocation2 + $0x10] sm:$0xff] %vm951_vm1, %v994_v62 }
 0x33f   : > { %v1038_v0 = vadd.f32 %v2829_v56, %v1030_v63 }
 0x340   : > { %v1045_v4 = vld [vmem:[#allocation2] sm:$0xff] }
 0x341   : > { %1042 = vst.msk [vmem:[#allocation2 + $0x18] sm:$0xff] %vm951_vm1, %v1038_v0  ;;  %v2889_v1 = vpack.c.bf16 %v1038_v0, %v1037_v61 }
 0x343   : > { %2954 = vmatmul.mubr.msk.bf16.vlgmr.msra.gmra.mrb[0].mxu1 %vm951_vm1, %v2889_v1 }
 0x344   : > { %2958 = vmatpush3.bf16.msra.mxu1 %v3304_v32  ;;  %v1046_v5 = vld [vmem:[#allocation2 + $0x8] sm:$0xff] }
 0x345   : > { %2959 = vmatprep.subr.bf16.mxu1 %v3305_v2  ;;  %v1049_v7 = vpack.c.bf16 %v1046_v5, %v1045_v4  ;;  %v1047_v8 = vld [vmem:[#allocation2 + $0x10] sm:$0xff] }
 0x347   : > { %2961 = vmatprep.mubr.msk.bf16.mxu1 %vm951_vm1, %v1049_v7 }
 0x348   : > { %2960 = vmatpush3.bf16.msra.mxu1 %v3305_v2  ;;  %v1048_v9 = vld [vmem:[#allocation2 + $0x18] sm:$0xff] }
 0x349   : > { %v1050_v10 = vpack.c.bf16 %v1048_v9, %v1047_v8  ;;  %2965 = vmatprep.subr.bf16.mxu1 %v3973_v30 }
 0x34b   : > { %2962 = vmatmul.mubr.msk.bf16.vlgmr.msra.gmra.mrb[4].mxu1 %vm951_vm1, %v1050_v10 }
 0x34c   : > { %2967 = vmatprep.mubr.msk.bf16.mxu1 %vm3974_vm2, %v3973_v30 }
 0x416   : > { %v1109_v11 = vpop.f32.mrb[0].mxu1 }
 0x417   : > { %v2955_v12 = vpop.f32.mrb[1].mxu1  ;;  %v4797_v22 = vpack.c.bf16 %v1109_v11, %v1109_v11 }
 0x418   : > { %v1112_v13 = vpop.f32.mrb[2].mxu1 }
 0x419   : > { %v2956_v14 = vpop.f32.mrb[3].mxu1  ;;  %v4806_v24 = vpack.c.bf16 %v1112_v13, %v1112_v13 }
 0x41e   : > { %v2963_v15 = vpop.f32.mrb[4].mxu1 }
 0x41f   : > { %v1172_v16 = vpop.f32.mrb[5].mxu1 }
 0x420   : > { %v2964_v17 = vpop.f32.mrb[6].mxu1 }
 0x421   : > { %v4790_v18 = vpack.c.bf16 %v2964_v17, %v2963_v15  ;;  %v1175_v19 = vpop.f32.mrb[7].mxu1 }
 0x422   : > { %v4792_v20 = vpack.c.bf16 %v1175_v19, %v1172_v16 }
 0x423   : > { %v1246_v23 = vsel %vm1195_vm3, %v4790_v18, 0 }
 0x424   : > { %v1200_v21 = vsel %vm1195_vm3, %v4792_v20, 0 }
 0x425   : > { %2966 = vmatpush3.bf16.xpose.msra.mxu1 %v1200_v21 }
 0x426   : > { %2971 = vmatprep.subr.bf16.mxu1 %v3973_v30 }
 0x42c   : > { %2968 = vmatmul.mubr.msk.bf16.vlgmr.msra.gmra.mrb[8].mxu1 %vm1195_vm3, %v4797_v22 }
 0x42d   : > { %2972 = vmatpush3.bf16.xpose.msra.mxu1 %v1246_v23  ;;  %2973 = vmatprep.mubr.msk.bf16.mxu1 %vm3974_vm2, %v3973_v30 }
 0x42e   : > { %2983 = vmatprep.subr.bf16.mxu1 %v3973_v30 }
 0x434   : > { %2974 = vmatmul.mubr.msk.bf16.vlgmr.msra.gmra.mrb[12].mxu1 %vm1195_vm3, %v4806_v24 }
 0x435   : > { %2985 = vmatprep.mubr.msk.bf16.mxu1 %vm3974_vm2, %v3973_v30 }
 0x4ff   : > { %v1236_v25 = vpop.f32.mrb[8].mxu1 }
 0x500   : > { %v2969_v26 = vpop.f32.mrb[9].mxu1  ;;  %v1289_v27 = vsel %vm1288_vm4, %v1236_v25, -inf }
 0x501   : > { %1290 = vmax.xlane.f32.xlu0 %v1289_v27  ;;  %v1239_v28 = vpop.f32.mrb[10].mxu1 }
 0x502   : > { %v2970_v29 = vpop.f32.mrb[11].mxu1 }
 0x507   : > { %v1282_v31 = vpop.f32.mrb[12].mxu1 }
 0x508   : > { %v2975_v32 = vpop.f32.mrb[13].mxu1  ;;  %v1292_v33 = vsel %vm1288_vm4, %v1282_v31, -inf }
 0x509   : > { %1293 = vmax.xlane.f32.xlu1 %v1292_v33  ;;  %v1285_v34 = vpop.f32.mrb[14].mxu1 }
 0x50a   : > { %v2976_v35 = vpop.f32.mrb[15].mxu1 }
 0x51a   : > { %1363 = vrot.lane.b32.xlu1 %v4790_v18, %s3975_s0 }
 0x51e   : > { %1413 = vrot.lane.b32.xlu1 %v4792_v20, %s3976_s27 }
 0x58e   : > { %v1291_v36 = vpop.xlane.xlu0 %1290 }
 0x58f   : > { %v1295_v37 = vsub.f32 %v1236_v25, %v1291_v36 }
 0x591   : > { %v1297_v38 = vmul.f32 1.442695, %v1295_v37 }
 0x593   : > { %3326 = vpow2.f32 %v1297_v38 }
 0x596   : > { %v1294_v39 = vpop.xlane.xlu1 %1293 }
 0x597   : > { %v1296_v40 = vsub.f32 %v1282_v31, %v1294_v39 }
 0x599   : > { %v1299_v41 = vmul.f32 1.442695, %v1296_v40 }
 0x59a   : > { %v1364_v42 = vpop.permute.xlu1 %1363 }
 0x59b   : > { %3328 = vpow2.f32 %v1299_v41  ;;  %2984 = vmatpush3.bf16.msra.mxu1 %v1364_v42 }
 0x59c   : > { %2995 = vmatprep.subr.bf16.mxu1 %v3973_v30 }
 0x59d   : > { %v3327_v43 = vpop.eup %3326 }
 0x59e   : > { %v1301_v44 = vsel %vm1288_vm4, %v3327_v43, 0.0  ;;  %v1414_v49 = vpop.permute.xlu1 %1413 }
 0x59f   : > { %1302 = vadd.xlane.f32.xlu0 %v1301_v44  ;;  %v1419_v56 = vsel %vm1195_vm3, %v1414_v49, 0 }
 0x5a5   : > { %v3329_v45 = vpop.eup %3328 }
 0x5a6   : > { %v1304_v46 = vsel %vm1288_vm4, %v3329_v45, 0.0 }
 0x5a7   : > { %1305 = vadd.xlane.f32.xlu1 %v1304_v46 }
 0x5b5   : > { %1316 = vrot.lane.b32.xlu0 %v4792_v20, %s3975_s0 }
 0x5b8   : > { %1463 = vrot.lane.b32.xlu1 %v4790_v18, %s3976_s27 }
 0x5b9   : > { %1411 = vrot.lane.b32.xlu0 %v4797_v22, %s3976_s27 }
 0x5bc   : > { %1461 = vrot.lane.b32.xlu1 %v4806_v24, %s3976_s27 }
 0x62c   : > { %v1303_v47 = vpop.xlane.xlu0 %1302 }
 0x62d   : > { %v1307_v48 = vmul.f32 2.828427, %v1303_v47 }
 0x62f   : > { %3330 = vrcp.f32 %v1307_v48 }
 0x630   : > { %v1317_v50 = vpop.permute.xlu0 %1316 }
 0x631   : > { %2978 = vmatpush3.bf16.msra.mxu0 %v1317_v50 }
 0x632   : > { %2989 = vmatprep.subr.bf16.mxu0 %v3973_v30 }
 0x634   : > { %v1306_v51 = vpop.xlane.xlu1 %1305  ;;  %v1412_v61 = vpop.permute.xlu0 %1411 }
 0x635   : > { %v1308_v52 = vmul.f32 2.828427, %v1306_v51 }
 0x637   : > { %3332 = vrcp.f32 %v1308_v52 }
 0x638   : > { %v1464_v59 = vpop.permute.xlu1 %1463 }
 0x639   : > { %v3331_v53 = vpop.eup %3330  ;;  %v1469_v62 = vsel %vm1195_vm3, %v1464_v59, 0 }
 0x63a   : > { %v1311_v54 = vmul.f32 %v3331_v53, %v3327_v43 }
 0x63c   : > { %v1313_v55 = vpack.c.bf16 %v1311_v54, %v1311_v54  ;;  %v1462_v63 = vpop.permute.xlu1 %1461 }
 0x63e   : > { %2980 = vmatmul.mubr.msk.bf16.vlgmr.msra.gmra.mrb[0].mxu0 %vm1288_vm4, %v1313_v55 }
 0x63f   : > { %2990 = vmatpush3.bf16.xpose.msra.mxu0 %v1419_v56  ;;  %2991 = vmatprep.mubr.msk.bf16.mxu0 %vm3974_vm2, %v3973_v30 }
 0x640   : > { %3001 = vmatprep.subr.bf16.mxu0 %v3973_v30 }
 0x641   : > { %v3333_v57 = vpop.eup %3332 }
 0x642   : > { %v1312_v58 = vmul.f32 %v3333_v57, %v3329_v45 }
 0x644   : > { %v1314_v60 = vpack.c.bf16 %v1312_v58, %v1312_v58 }
 0x646   : > { %2986 = vmatmul.mubr.msk.bf16.vlgmr.msra.gmra.mrb[16].mxu1 %vm1288_vm4, %v1314_v60  ;;  %2992 = vmatmul.mubr.msk.bf16.vlgmr.msra.gmra.mrb[4].mxu0 %vm1195_vm3, %v1412_v61 }
 0x647   : > { %2996 = vmatpush3.bf16.xpose.msra.mxu1 %v1469_v62  ;;  %2997 = vmatprep.mubr.msk.bf16.mxu1 %vm3974_vm2, %v3973_v30 }
 0x648   : > { %3007 = vmatprep.subr.bf16.mxu1 %v3973_v30  ;;  %3003 = vmatprep.mubr.msk.bf16.mxu0 %vm3974_vm2, %v3973_v30 }
 0x64e   : > { %2998 = vmatmul.mubr.msk.bf16.vlgmr.msra.gmra.mrb[20].mxu1 %vm1195_vm3, %v1462_v63 }
 0x64f   : > { %3009 = vmatprep.mubr.msk.bf16.mxu1 %vm3974_vm2, %v3973_v30 }
 0x711   : > { %v1356_v0 = vpop.f32.mrb[0].mxu0 }
 0x712   : > { %1409 = vst.msk [vmem:[#allocation3] sm:$0xff] %vm1195_vm3, %v1356_v0  ;;  %v2981_v1 = vpop.f32.mrb[1].mxu0 }
 0x713   : > { %v1359_v2 = vpop.f32.mrb[2].mxu0 }
 0x714   : > { %v2982_v4 = vpop.f32.mrb[3].mxu0 }
 0x719   : > { %v1403_v5 = vpop.f32.mrb[16].mxu1  ;;  %v1455_v7 = vpop.f32.mrb[4].mxu0 }
 0x71a   : > { %1410 = vst.msk [vmem:[#allocation3 + $0x8] sm:$0xff] %vm1195_vm3, %v1403_v5  ;;  %v2987_v8 = vpop.f32.mrb[17].mxu1  ;;  %v2993_v9 = vpop.f32.mrb[5].mxu0  ;;  %v1511_v10 = vsel %vm1288_vm4, %v1455_v7, -inf }
 0x71b   : > { %1512 = vmax.xlane.f32.xlu0 %v1511_v10  ;;  %v1406_v11 = vpop.f32.mrb[18].mxu1  ;;  %v1458_v12 = vpop.f32.mrb[6].mxu0 }
 0x71c   : > { %v2988_v13 = vpop.f32.mrb[19].mxu1  ;;  %v2994_v14 = vpop.f32.mrb[7].mxu0 }
 0x721   : > { %v1505_v15 = vpop.f32.mrb[20].mxu1 }
 0x722   : > { %v2999_v16 = vpop.f32.mrb[21].mxu1  ;;  %v1514_v17 = vsel %vm1288_vm4, %v1505_v15, -inf }
 0x723   : > { %1515 = vmax.xlane.f32.xlu1 %v1514_v17  ;;  %v1508_v19 = vpop.f32.mrb[22].mxu1 }
 0x724   : > { %v3000_v21 = vpop.f32.mrb[23].mxu1 }
 0x734   : > { %1583 = vrot.lane.b32.xlu1 %v4790_v18, %s3977_s7 }
 0x738   : > { %1642 = vrot.lane.b32.xlu1 %v4792_v20, %s3978_s17 }
 0x73c   : > { %1692 = vrot.lane.b32.xlu1 %v4790_v18, %s3978_s17 }
 0x740   : > { %1690 = vrot.lane.b32.xlu1 %v4806_v24, %s3978_s17 }
 0x7a8   : > { %v1513_v23 = vpop.xlane.xlu0 %1512 }
 0x7a9   : > { %v1517_v25 = vsub.f32 %v1455_v7, %v1513_v23 }
 0x7ab   : > { %v1519_v26 = vmul.f32 1.442695, %v1517_v25 }
 0x7ad   : > { %3334 = vpow2.f32 %v1519_v26 }
 0x7b0   : > { %v1516_v27 = vpop.xlane.xlu1 %1515 }
 0x7b1   : > { %v1518_v28 = vsub.f32 %v1505_v15, %v1516_v27 }
 0x7b3   : > { %v1521_v29 = vmul.f32 1.442695, %v1518_v28 }
 0x7b4   : > { %v1584_v31 = vpop.permute.xlu1 %1583 }
 0x7b5   : > { %3336 = vpow2.f32 %v1521_v29  ;;  %3008 = vmatpush3.bf16.msra.mxu1 %v1584_v31 }
 0x7b6   : > { %3019 = vmatprep.subr.bf16.mxu1 %v3973_v30 }
 0x7b7   : > { %v3335_v32 = vpop.eup %3334 }
 0x7b8   : > { %v1523_v33 = vsel %vm1288_vm4, %v3335_v32, 0.0  ;;  %v1643_v44 = vpop.permute.xlu1 %1642 }
 0x7b9   : > { %1524 = vadd.xlane.f32.xlu0 %v1523_v33  ;;  %v1648_v46 = vsel %vm1195_vm3, %v1643_v44, 0 }
 0x7bc   : > { %v1693_v48 = vpop.permute.xlu1 %1692 }
 0x7bd   : > { %v1698_v50 = vsel %vm1195_vm3, %v1693_v48, 0 }
 0x7bf   : > { %v3337_v34 = vpop.eup %3336 }
 0x7c0   : > { %v1526_v35 = vsel %vm1288_vm4, %v3337_v34, 0.0  ;;  %v1691_v52 = vpop.permute.xlu1 %1690 }
 0x7c1   : > { %1527 = vadd.xlane.f32.xlu0 %v1526_v35 }
 0x7d7   : > { %1537 = vrot.lane.b32.xlu0 %v4792_v20, %s3977_s7 }
 0x7db   : > { %1640 = vrot.lane.b32.xlu0 %v4797_v22, %s3978_s17 }
 0x846   : > { %v1525_v36 = vpop.xlane.xlu0 %1524 }
 0x847   : > { %v1529_v37 = vmul.f32 2.828427, %v1525_v36 }
 0x849   : > { %3338 = vrcp.f32 %v1529_v37 }
 0x84e   : > { %v1528_v38 = vpop.xlane.xlu0 %1527 }
 0x84f   : > { %v1530_v39 = vmul.f32 2.828427, %v1528_v38 }
 0x851   : > { %3340 = vrcp.f32 %v1530_v39 }
 0x852   : > { %v1538_v40 = vpop.permute.xlu0 %1537 }
 0x853   : > { %v3339_v41 = vpop.eup %3338  ;;  %3002 = vmatpush3.bf16.msra.mxu0 %v1538_v40 }
 0x854   : > { %v1533_v42 = vmul.f32 %v3339_v41, %v3335_v32  ;;  %3013 = vmatprep.subr.bf16.mxu0 %v3973_v30 }
 0x856   : > { %v1535_v43 = vpack.c.bf16 %v1533_v42, %v1533_v42  ;;  %v1641_v51 = vpop.permute.xlu0 %1640 }
 0x858   : > { %3004 = vmatmul.mubr.msk.bf16.vlgmr.msra.gmra.mrb[8].mxu0 %vm1288_vm4, %v1535_v43 }
 0x859   : > { %3015 = vmatprep.mubr.msk.bf16.mxu0 %vm3974_vm2, %v3973_v30 }
 0x85b   : > { %v3341_v45 = vpop.eup %3340 }
 0x85c   : > { %v1534_v47 = vmul.f32 %v3341_v45, %v3337_v34  ;;  %3014 = vmatpush3.bf16.xpose.msra.mxu0 %v1648_v46 }
 0x85d   : > { %3025 = vmatprep.subr.bf16.mxu0 %v3973_v30 }
 0x85e   : > { %v1536_v49 = vpack.c.bf16 %v1534_v47, %v1534_v47 }
 0x860   : > { %3010 = vmatmul.mubr.msk.bf16.vlgmr.msra.gmra.mrb[24].mxu1 %vm1288_vm4, %v1536_v49 }
 0x861   : > { %3020 = vmatpush3.bf16.xpose.msra.mxu1 %v1698_v50  ;;  %3021 = vmatprep.mubr.msk.bf16.mxu1 %vm3974_vm2, %v3973_v30 }
 0x862   : > { %3031 = vmatprep.subr.bf16.mxu1 %v3973_v30 }
 0x863   : > { %3016 = vmatmul.mubr.msk.bf16.vlgmr.msra.gmra.mrb[12].mxu0 %vm1195_vm3, %v1641_v51 }
 0x864   : > { %3027 = vmatprep.mubr.msk.bf16.mxu0 %vm3974_vm2, %v3973_v30 }
 0x868   : > { %3022 = vmatmul.mubr.msk.bf16.vlgmr.msra.gmra.mrb[28].mxu1 %vm1195_vm3, %v1691_v52 }
 0x869   : > { %3033 = vmatprep.mubr.msk.bf16.mxu1 %vm3974_vm2, %v3973_v30 }
 0x92b   : > { %v4870_v53 = vpop.f32.mrb[8].mxu0 }
 0x92c   : > { %v3005_v54 = vpop.f32.mrb[9].mxu0 }
 0x92d   : > { %v1580_v55 = vpop.f32.mrb[10].mxu0 }
 0x92e   : > { %v3006_v56 = vpop.f32.mrb[11].mxu0 }
 0x933   : > { %v4872_v57 = vpop.f32.mrb[24].mxu1 }
 0x934   : > { %v3011_v58 = vpop.f32.mrb[25].mxu1 }
 0x935   : > { %v1626_v59 = vpop.f32.mrb[26].mxu1 }
 0x936   : > { %v3012_v60 = vpop.f32.mrb[27].mxu1  ;;  %v1684_v61 = vpop.f32.mrb[12].mxu0 }
 0x937   : > { %v3017_v62 = vpop.f32.mrb[13].mxu0  ;;  %v1740_v63 = vsel %vm1288_vm4, %v1684_v61, -inf }
 0x938   : > { %1741 = vmax.xlane.f32.xlu0 %v1740_v63  ;;  %v1687_v0 = vpop.f32.mrb[14].mxu0 }
 0x939   : > { %v3018_v1 = vpop.f32.mrb[15].mxu0 }
 0x93b   : > { %v1734_v2 = vpop.f32.mrb[28].mxu1 }
 0x93c   : > { %v3023_v4 = vpop.f32.mrb[29].mxu1  ;;  %v1743_v5 = vsel %vm1288_vm4, %v1734_v2, -inf }
 0x93d   : > { %1744 = vmax.xlane.f32.xlu1 %v1743_v5  ;;  %v1737_v7 = vpop.f32.mrb[30].mxu1 }
 0x93e   : > { %v3024_v8 = vpop.f32.mrb[31].mxu1 }
 0x94e   : > { %1812 = vrot.lane.b32.xlu1 %v4790_v18, %s3979_s5 }
 0x952   : > { %1871 = vrot.lane.b32.xlu1 %v4792_v20, %s3980_s16 }
 0x956   : > { %1921 = vrot.lane.b32.xlu1 %v4790_v18, %s3980_s16 }
 0x95a   : > { %1919 = vrot.lane.b32.xlu1 %v4806_v24, %s3980_s16 }
 0x9c5   : > { %v1742_v9 = vpop.xlane.xlu0 %1741 }
 0x9c6   : > { %v1746_v10 = vsub.f32 %v1684_v61, %v1742_v9 }
 0x9c8   : > { %v1748_v11 = vmul.f32 1.442695, %v1746_v10 }
 0x9ca   : > { %3342 = vpow2.f32 %v1748_v11  ;;  %v1745_v12 = vpop.xlane.xlu1 %1744 }
 0x9cb   : > { %v1747_v13 = vsub.f32 %v1734_v2, %v1745_v12 }
 0x9cd   : > { %v1750_v14 = vmul.f32 1.442695, %v1747_v13 }
 0x9ce   : > { %v1813_v15 = vpop.permute.xlu1 %1812 }
 0x9cf   : > { %3344 = vpow2.f32 %v1750_v14  ;;  %3032 = vmatpush3.bf16.msra.mxu1 %v1813_v15 }
 0x9d0   : > { %3043 = vmatprep.subr.bf16.mxu1 %v3973_v30 }
 0x9d2   : > { %v1872_v29 = vpop.permute.xlu1 %1871 }
 0x9d3   : > { %v1877_v34 = vsel %vm1195_vm3, %v1872_v29, 0 }
 0x9d4   : > { %v3343_v16 = vpop.eup %3342 }
 0x9d5   : > { %v1752_v17 = vsel %vm1288_vm4, %v3343_v16, 0.0 }
 0x9d6   : > { %1753 = vadd.xlane.f32.xlu0 %v1752_v17  ;;  %v1922_v35 = vpop.permute.xlu1 %1921 }
 0x9d7   : > { %v1927_v37 = vsel %vm1195_vm3, %v1922_v35, 0 }
 0x9d9   : > { %v3345_v19 = vpop.eup %3344 }
 0x9da   : > { %v1755_v21 = vsel %vm1288_vm4, %v3345_v19, 0.0  ;;  %v1920_v39 = vpop.permute.xlu1 %1919 }
 0x9db   : > { %1756 = vadd.xlane.f32.xlu0 %v1755_v21 }
 0x9f1   : > { %1766 = vrot.lane.b32.xlu0 %v4792_v20, %s3979_s5 }
 0x9f5   : > { %1869 = vrot.lane.b32.xlu0 %v4797_v22, %s3980_s16 }
 0xa63   : > { %v1754_v24 = vpop.xlane.xlu0 %1753 }
 0xa64   : > { %v1758_v23 = vmul.f32 2.828427, %v1754_v24  ;;  %v3306_v24 = vld [vmem:[%s796_s23] sm:$0xff]  }
 0xa66   : > { %3346 = vrcp.f32 %v1758_v23  ;;  %v3307_v23 = vld [vmem:[%s796_s23 + $0x8] sm:$0xff]  }
 0xa68   : > { %v1757_v25 = vpop.xlane.xlu0 %1756 }
 0xa69   : > { %v1759_v26 = vmul.f32 2.828427, %v1757_v25 }
 0xa6b   : > { %3348 = vrcp.f32 %v1759_v26 }
 0xa6c   : > { %v1767_v27 = vpop.permute.xlu0 %1766 }
 0xa6d   : > { %3026 = vmatpush3.bf16.msra.mxu0 %v1767_v27 }
 0xa6e   : > { %3037 = vmatprep.subr.bf16.mxu0 %v3973_v30 }
 0xa70   : > { %v3347_v28 = vpop.eup %3346  ;;  %v1870_v38 = vpop.permute.xlu0 %1869 }
 0xa71   : > { %v1762_v31 = vmul.f32 %v3347_v28, %v3343_v16 }
 0xa73   : > { %v1764_v32 = vpack.c.bf16 %v1762_v31, %v1762_v31 }
 0xa75   : > { %v3349_v33 = vpop.eup %3348  ;;  %3028 = vmatmul.mubr.msk.bf16.vlgmr.msra.gmra.mrb[16].mxu0 %vm1288_vm4, %v1764_v32 }
 0xa76   : > { %v1763_v22 = vmul.f32 %v3349_v33, %v3345_v19  ;;  %3038 = vmatpush3.bf16.xpose.msra.mxu0 %v1877_v34  ;;  %3039 = vmatprep.mubr.msk.bf16.mxu0 %vm3974_vm2, %v3973_v30 }
 0xa77   : > { %3049 = vmatprep.subr.bf16.mxu0 %v3973_v30 }
 0xa78   : > { %v1765_v36 = vpack.c.bf16 %v1763_v22, %v1763_v22 }
 0xa7a   : > { %3034 = vmatmul.mubr.msk.bf16.vlgmr.msra.gmra.mrb[32].mxu1 %vm1288_vm4, %v1765_v36 }
 0xa7b   : > { %3044 = vmatpush3.bf16.xpose.msra.mxu1 %v1927_v37  ;;  %3045 = vmatprep.mubr.msk.bf16.mxu1 %vm3974_vm2, %v3973_v30 }
 0xa7c   : > { %3055 = vmatprep.subr.bf16.mxu1 %v3973_v30 }
 0xa7d   : > { %3040 = vmatmul.mubr.msk.bf16.vlgmr.msra.gmra.mrb[20].mxu0 %vm1195_vm3, %v1870_v38 }
 0xa7e   : > { %3051 = vmatprep.mubr.msk.bf16.mxu0 %vm3974_vm2, %v3973_v30 }
 0xa82   : > { %3046 = vmatmul.mubr.msk.bf16.vlgmr.msra.gmra.mrb[36].mxu1 %vm1195_vm3, %v1920_v39 }
 0xa83   : > { %3057 = vmatprep.mubr.msk.bf16.mxu1 %vm3974_vm2, %v3973_v30 }
 0xb48   : > { %v1806_v40 = vpop.f32.mrb[16].mxu0 }
 0xb49   : > { %v3029_v41 = vpop.f32.mrb[17].mxu0 }
 0xb4a   : > { %v1809_v42 = vpop.f32.mrb[18].mxu0 }
 0xb4b   : > { %v3030_v43 = vpop.f32.mrb[19].mxu0 }
 0xb4d   : > { %v1852_v44 = vpop.f32.mrb[32].mxu1 }
 0xb4e   : > { %v3035_v45 = vpop.f32.mrb[33].mxu1 }
 0xb4f   : > { %v1855_v46 = vpop.f32.mrb[34].mxu1 }
 0xb50   : > { %v3036_v47 = vpop.f32.mrb[35].mxu1  ;;  %v1913_v48 = vpop.f32.mrb[20].mxu0 }
 0xb51   : > { %v3041_v49 = vpop.f32.mrb[21].mxu0  ;;  %v1969_v50 = vsel %vm1288_vm4, %v1913_v48, -inf }
 0xb52   : > { %1970 = vmax.xlane.f32.xlu0 %v1969_v50  ;;  %v1916_v51 = vpop.f32.mrb[22].mxu0 }
 0xb53   : > { %v3042_v52 = vpop.f32.mrb[23].mxu0 }
 0xb55   : > { %v1963_v54 = vpop.f32.mrb[36].mxu1 }
 0xb56   : > { %v3047_v55 = vpop.f32.mrb[37].mxu1  ;;  %v1972_v56 = vsel %vm1288_vm4, %v1963_v54, -inf }
 0xb57   : > { %1973 = vmax.xlane.f32.xlu1 %v1972_v56  ;;  %v1966_v58 = vpop.f32.mrb[38].mxu1  ;;  %v3308_v55 = vld [vmem:[%s821_s30] sm:$0xff]   ;;  %v3309_v56 = vld [vmem:[%s821_s30 + $0x8] sm:$0xff]  }
 0xb58   : > { %v3048_v59 = vpop.f32.mrb[39].mxu1  ;;  %v3310_v58 = vld [vmem:[%s4719_s12] sm:$0xff]  }
 0xb59   : > { %v3311_v59 = vld [vmem:[%s4719_s12 + $0x8] sm:$0xff]  }
 0xb68   : > { %2041 = vrot.lane.b32.xlu1 %v4790_v18, %s3981_s1 }
 0xb6c   : > { %1631 = vrot.lane.b32.xlu1 %v4870_v53, %s3982_s14 }
 0xb70   : > { %1633 = vrot.lane.b32.xlu1 %v4872_v57, %s3982_s14 }
 0xb74   : > { %1862 = vrot.lane.b32.xlu1 %v1852_v44, %s3983_s10 }
 0xbdf   : > { %v1971_v60 = vpop.xlane.xlu0 %1970 }
 0xbe0   : > { %v1975_v61 = vsub.f32 %v1913_v48, %v1971_v60  ;;  %v3312_v60 = vld [vmem:[%s4719_s12 + $0x10] sm:$0xff]  }
 0xbe2   : > { %v1977_v62 = vmul.f32 1.442695, %v1975_v61 }
 0xbe4   : > { %3350 = vpow2.f32 %v1977_v62  ;;  %v1974_v63 = vpop.xlane.xlu1 %1973 }
 0xbe5   : > { %v1976_v0 = vsub.f32 %v1963_v54, %v1974_v63 }
 0xbe7   : > { %v1979_v1 = vmul.f32 1.442695, %v1976_v0 }
 0xbe8   : > { %v2042_v2 = vpop.permute.xlu1 %2041 }
 0xbe9   : > { %3352 = vpow2.f32 %v1979_v1  ;;  %3056 = vmatpush3.bf16.msra.mxu1 %v2042_v2 }
 0xbea   : > { %3069 = vmatprep.subr.bf16.mxu1 %v3973_v30 }
 0xbec   : > { %v1632_v18 = vpop.permute.xlu1 %1631 }
 0xbed   : > { %1638 = vst.msk [vmem:[#allocation3] sm:$0xff] %vm1637_vm5, %v1632_v18 }
 0xbee   : > { %v3351_v53 = vpop.eup %3350 }
 0xbef   : > { %v1981_v57 = vsel %vm1288_vm4, %v3351_v53, 0.0 }
 0xbf0   : > { %1982 = vadd.xlane.f32.xlu0 %v1981_v57  ;;  %v1634_v4 = vpop.permute.xlu1 %1633  ;;  %v2860_v57 = vld [vmem:[%s804_s19] ss:$0 sm:$0xff] }
 0xbf1   : > { %1639 = vst.msk [vmem:[#allocation3 + $0x8] sm:$0xff] %vm1637_vm5, %v1634_v4 }
 0xbf3   : > { %v3353_v5 = vpop.eup %3352 }
 0xbf4   : > { %v1863_v7 = vpop.permute.xlu1 %1862  ;;  %v1984_v8 = vsel %vm1288_vm4, %v3353_v5, 0.0 }
 0xbf5   : > { %1868 = vst.msk [vmem:[#allocation3 + $0x8] sm:$0xff] %vm1866_vm6, %v1863_v7  ;;  %1985 = vadd.xlane.f32.xlu0 %v1984_v8  ;;  %v2861_v8 = vld [vmem:[%s812_s6] ss:$0 sm:$0xff] }
 0xc0b   : > { %1995 = vrot.lane.b32.xlu0 %v4792_v20, %s3981_s1 }
 0xc0f   : > { %1860 = vrot.lane.b32.xlu0 %v1806_v40, %s3983_s10 }
 0xc7d   : > { %v1983_v9 = vpop.xlane.xlu0 %1982 }
 0xc7e   : > { %v1987_v10 = vmul.f32 2.828427, %v1983_v9 }
 0xc80   : > { %3354 = vrcp.f32 %v1987_v10 }
 0xc82   : > { %v1986_v11 = vpop.xlane.xlu0 %1985 }
 0xc83   : > { %v1988_v12 = vmul.f32 2.828427, %v1986_v11 }
 0xc85   : > { %3356 = vrcp.f32 %v1988_v12 }
 0xc86   : > { %v1996_v13 = vpop.permute.xlu0 %1995 }
 0xc87   : > { %3050 = vmatpush3.bf16.msra.mxu0 %v1996_v13  ;;  %v3313_v13 = vld [vmem:[%s4719_s12 + $0x18] sm:$0xff]  }
 0xc88   : > { %3061 = vmatprep.subr.bf16.mxu0 %v3973_v30 }
 0xc8a   : > { %v3355_v14 = vpop.eup %3354  ;;  %v1861_v15 = vpop.permute.xlu0 %1860 }
 0xc8b   : > { %v1991_v16 = vmul.f32 %v3355_v14, %v3351_v53  ;;  %1867 = vst.msk [vmem:[#allocation3] sm:$0xff] %vm1866_vm6, %v1861_v15  ;;  %v3314_v14 = vld [vmem:[%s4719_s12 + $0x20] sm:$0xff]   ;;  %v3315_v15 = vld [vmem:[%s4719_s12 + $0x28] sm:$0xff]  }
 0xc8d   : > { %v1993_v17 = vpack.c.bf16 %v1991_v16, %v1991_v16  ;;  %v3316_v16 = vld [vmem:[%s4719_s12 + $0x30] sm:$0xff]  }
 0xc8f   : > { %v3357_v20 = vpop.eup %3356  ;;  %3052 = vmatmul.mubr.msk.bf16.vlgmr.msra.gmra.mrb[24].mxu0 %vm1288_vm4, %v1993_v17  ;;  %v3317_v17 = vld [vmem:[%s4719_s12 + $0x38] sm:$0xff]  }
 0xc90   : > { %v1992_v19 = vmul.f32 %v3357_v20, %v3353_v5  ;;  %3065 = vmatprep.mubr.msk.bf16.mxu0 %vm3974_vm2, %v3973_v30  ;;  %3062 = vmatpush3.bf16.msra.mxu0 %v3306_v24 }
 0xc91   : > { %3063 = vmatprep.subr.bf16.mxu0 %v3973_v30 }
 0xc92   : > { %v1994_v21 = vpack.c.bf16 %v1992_v19, %v1992_v19 }
 0xc94   : > { %3058 = vmatmul.mubr.msk.bf16.vlgmr.msra.gmra.mrb[40].mxu1 %vm1288_vm4, %v1994_v21  ;;  %3064 = vmatpush3.bf16.msra.mxu0 %v3307_v23 }
 0xc95   : > { %3073 = vmatprep.mubr.msk.bf16.mxu1 %vm3974_vm2, %v3973_v30  ;;  %3077 = vmatprep.subr.bf16.mxu0 %v3973_v30 }
 0xc96   : > { %3070 = vmatpush3.bf16.msra.mxu1 %v3308_v55 }
 0xc97   : > { %3071 = vmatprep.subr.bf16.mxu1 %v3973_v30 }
 0xc9a   : > { %3072 = vmatpush3.bf16.msra.mxu1 %v3309_v56 }
 0xd62   : > { %v2035_v25 = vpop.f32.mrb[24].mxu0 }
 0xd63   : > { %2089 = vrot.lane.b32.xlu0 %v2035_v25, %s3984_s11  ;;  %v3053_v26 = vpop.f32.mrb[25].mxu0 }
 0xd64   : > { %v2038_v27 = vpop.f32.mrb[26].mxu0 }
 0xd65   : > { %v3054_v28 = vpop.f32.mrb[27].mxu0 }
 0xd67   : > { %v2081_v29 = vpop.f32.mrb[40].mxu1 }
 0xd68   : > { %2091 = vrot.lane.b32.xlu1 %v2081_v29, %s3984_s11  ;;  %v3059_v31 = vpop.f32.mrb[41].mxu1 }
 0xd69   : > { %v2084_v32 = vpop.f32.mrb[42].mxu1 }
 0xd6a   : > { %v3060_v33 = vpop.f32.mrb[43].mxu1 }
 0xdd5   : > { %v2090_v34 = vpop.permute.xlu0 %2089 }
 0xdd6   : > { %2096 = vst.msk [vmem:[#allocation3] sm:$0xff] %vm2095_vm7, %v2090_v34 }
 0xdda   : > { %v2092_v22 = vpop.permute.xlu1 %2091 }
 0xddb   : > { %2097 = vst.msk [vmem:[#allocation3 + $0x8] sm:$0xff] %vm2095_vm7, %v2092_v22 }
 0xddd   : > { %v2098_v35 = vld [vmem:[#allocation3] sm:$0xff] }
 0xde2   : > { %v2099_v36 = vld [vmem:[#allocation3 + $0x8] sm:$0xff] }
 0xde3   : > { %v2892_v37 = vpack.c.bf16 %v2099_v36, %v2098_v35 }
 0xde5   : > { %3066 = vmatmul.mubr.msk.bf16.vlgmr.msra.gmra.mrb[28].mxu0 %vm951_vm1, %v2892_v37 }
 0xde6   : > { %3093 = vmatprep.mubr.msk.bf16.mxu0 %vm3974_vm2, %v3973_v30  ;;  %3078 = vmatpush3.bf16.msra.mxu0 %v3310_v58 }
 0xde7   : > { %3079 = vmatprep.subr.bf16.mxu0 %v3973_v30 }
 0xdea   : > { %3080 = vmatpush3.bf16.msra.mxu0 %v3311_v59  ;;  %v2875_v59 = vld [vmem:[#allocation20] ss:$0 sm:$0xff] (!%p2874_p7) }
 0xdeb   : > { %3081 = vmatprep.subr.bf16.mxu0 %v3973_v30 }
 0xdee   : > { %3082 = vmatpush3.bf16.msra.mxu0 %v3312_v60 }
 0xdef   : > { %3083 = vmatprep.subr.bf16.mxu0 %v3973_v30 }
 0xdf2   : > { %3084 = vmatpush3.bf16.msra.mxu0 %v3313_v13 }
 0xdf3   : > { %3085 = vmatprep.subr.bf16.mxu0 %v3973_v30 }
 0xdf6   : > { %3086 = vmatpush3.bf16.msra.mxu0 %v3314_v14 }
 0xdf7   : > { %3087 = vmatprep.subr.bf16.mxu0 %v3973_v30 }
 0xdfa   : > { %3088 = vmatpush3.bf16.msra.mxu0 %v3315_v15 }
 0xdfb   : > { %3089 = vmatprep.subr.bf16.mxu0 %v3973_v30 }
 0xdfe   : > { %3090 = vmatpush3.bf16.msra.mxu0 %v3316_v16 }
 0xdff   : > { %3091 = vmatprep.subr.bf16.mxu0 %v3973_v30 }
 0xe02   : > { %3092 = vmatpush3.bf16.msra.mxu0 %v3317_v17 }
 0xeb8   : > { %v2160_v38 = vpop.f32.mrb[28].mxu0 }
 0xeb9   : > { %v4934_v39 = vadd.f32 %v2160_v38, %v4740_v3  ;;  %v3067_v40 = vpop.f32.mrb[29].mxu0 }
 0xeba   : > { %v2163_v41 = vpop.f32.mrb[30].mxu0 }
 0xebb   : > { %v4937_v42 = vadd.f32 %v2163_v41, %v4745_v6  ;;  %v3068_v43 = vpop.f32.mrb[31].mxu0  ;;  %v2171_v44 = vsel %vm951_vm1, %v4934_v39, 0.0 }
 0xebc   : > { %2172 = vadd.xlane.f32.xlu0 %v2171_v44 }
 0xebd   : > { %v2174_v45 = vsel %vm951_vm1, %v4937_v42, 0.0 }
 0xebe   : > { %2175 = vadd.xlane.f32.xlu1 %v2174_v45 }
 0xf49   : > { %v2173_v46 = vpop.xlane.xlu0 %2172 }
 0xf4a   : > { %v2177_v47 = vmul.f32 0.03125, %v2173_v46 }
 0xf4b   : > { %v2176_v3 = vpop.xlane.xlu1 %2175 }
 0xf4c   : > { %v2179_v48 = vsub.f32 %v4934_v39, %v2177_v47  ;;  %v2178_v6 = vmul.f32 0.03125, %v2176_v3 }
 0xf4e   : > { %v2180_v49 = vsub.f32 %v4937_v42, %v2178_v6  ;;  %v2181_v50 = vmul.f32 %v2179_v48, %v2179_v48 }
 0xf50   : > { %v2183_v51 = vsel %vm951_vm1, %v2181_v50, 0.0  ;;  %v2182_v52 = vmul.f32 %v2180_v49, %v2180_v49 }
 0xf51   : > { %2184 = vadd.xlane.f32.xlu0 %v2183_v51 }
 0xf52   : > { %v2186_v54 = vsel %vm951_vm1, %v2182_v52, 0.0 }
 0xf55   : > { %2187 = vadd.xlane.f32.xlu0 %v2186_v54 }
 0xfde   : > { %v2185_v61 = vpop.xlane.xlu0 %2184 }
 0xfdf   : > { %v2189_v62 = vmul.f32 0.03125, %v2185_v61  ;;  %v2876_v61 = vld [vmem:[#allocation21] ss:$0 sm:$0xff] (!%p2874_p7) }
 0xfe1   : > { %v2191_v63 = vadd.f32 1e-05, %v2189_v62 }
 0xfe2   : > { %v2188_v0 = vpop.xlane.xlu0 %2187 }
 0xfe3   : > { %3358 = vrsqrt.f32 %v2191_v63  ;;  %v2190_v1 = vmul.f32 0.03125, %v2188_v0 }
 0xfe5   : > { %v2192_v2 = vadd.f32 1e-05, %v2190_v1 }
 0xfe7   : > { %3360 = vrsqrt.f32 %v2192_v2 }
 0xfed   : > { %v3359_v18 = vpop.eup %3358 }
 0xfee   : > { %v2195_v53 = vmul.f32 %v3359_v18, %v2179_v48 }
 0xff0   : > { %v2203_v5 = vmul.f32 %v2860_v57, %v2195_v53 }
 0xff1   : > { %v3361_v4 = vpop.eup %3360 }
 0xff2   : > { %v2196_v7 = vmul.f32 %v3361_v4, %v2180_v49  ;;  %v2211_v10 = vadd.f32 %v2861_v8, %v2203_v5 }
 0xff4   : > { %v2204_v9 = vmul.f32 %v2860_v57, %v2196_v7 }
 0xff6   : > { %v2212_v11 = vadd.f32 %v2861_v8, %v2204_v9 }
 0xff8   : > { %v2893_v12 = vpack.c.bf16 %v2212_v11, %v2211_v10 }
 0xffa   : > { %3074 = vmatmul.mubr.msk.bf16.vlgmr.msra.gmra.mrb[44].mxu1 %vm951_vm1, %v2893_v12 }
0x10cd   : > { %v2273_v20 = vpop.f32.mrb[44].mxu1 }
0x10ce   : > { %v2282_v19 = vmul.f32 0.70710677, %v2273_v20  ;;  %v3075_v21 = vpop.f32.mrb[45].mxu1  ;;  %v2280_v29 = vmul.f32 0.5, %v2273_v20 }
0x10cf   : > { %v2276_v24 = vpop.f32.mrb[46].mxu1 }
0x10d0   : > { %3362 = verf.f32 %v2282_v19  ;;  %v2283_v23 = vmul.f32 0.70710677, %v2276_v24  ;;  %v3076_v25 = vpop.f32.mrb[47].mxu1  ;;  %v2281_v31 = vmul.f32 0.5, %v2276_v24 }
0x10d2   : > { %3364 = verf.f32 %v2283_v23 }
0x10da   : > { %v3363_v26 = vpop.eup %3362 }
0x10db   : > { %v2286_v27 = vadd.f32 1.0, %v3363_v26 }
0x10dc   : > { %v3365_v28 = vpop.eup %3364 }
0x10dd   : > { %v2287_v32 = vadd.f32 1.0, %v3365_v28  ;;  %v2288_v33 = vmul.f32 %v2286_v27, %v2280_v29 }
0x10df   : > { %v2289_v34 = vmul.f32 %v2287_v32, %v2281_v31 }
0x10e1   : > { %v2290_v22 = vpack.c.bf16 %v2289_v34, %v2288_v33 }
0x10e3   : > { %3094 = vmatmul.mubr.bf16.vlgmr.msra.gmra.mrb[32].mxu0 %v2290_v22 }
0x11b3   : > { %2401 = sbr.rel (%p2874_p7) target bundleno = 4855 (0x12f7), region = 148 }
0x11b6   : > { %v2389_v30 = vpop.f32.mrb[32].mxu0 }
0x11b7   : > { %v2396_v35 = vadd.f32 %v2389_v30, %v4934_v39  ;;  %v3095_v36 = vpop.f32.mrb[33].mxu0 }
0x11b8   : > { %v2392_v37 = vpop.f32.mrb[34].mxu0 }
0x11b9   : > { %v2397_v38 = vadd.f32 %v2392_v37, %v4937_v42  ;;  %v3096_v40 = vpop.f32.mrb[35].mxu0  ;;  %v2404_v41 = vsel (!%p2874_p7), %vm951_vm1, %v2396_v35, 0.0 }
0x11ba   : > { %2405 = vadd.xlane.f32.xlu0 %v2404_v41 }
0x11bb   : > { %v2407_v43 = vsel %vm951_vm1, %v2397_v38, 0.0 }
0x11be   : > { %2408 = vadd.xlane.f32.xlu0 %v2407_v43 }
0x1247   : > { %v2406_v44 = vpop.xlane.xlu0 %2405 }
0x1248   : > { %v2410_v45 = vmul.f32 0.03125, %v2406_v44 }
0x124a   : > { %v2412_v46 = vsub.f32 %v2396_v35, %v2410_v45 }
0x124b   : > { %v2409_v47 = vpop.xlane.xlu0 %2408 }
0x124c   : > { %v2411_v3 = vmul.f32 0.03125, %v2409_v47  ;;  %v2414_v39 = vmul.f32 %v2412_v46, %v2412_v46 }
0x124e   : > { %v2413_v48 = vsub.f32 %v2397_v38, %v2411_v3  ;;  %v2416_v6 = vsel %vm951_vm1, %v2414_v39, 0.0 }
0x124f   : > { %2417 = vadd.xlane.f32.xlu1 %v2416_v6 }
0x1250   : > { %v2415_v42 = vmul.f32 %v2413_v48, %v2413_v48 }
0x1252   : > { %v2419_v49 = vsel %vm951_vm1, %v2415_v42, 0.0 }
0x1253   : > { %2420 = vadd.xlane.f32.xlu1 %v2419_v49 }
0x12dc   : > { %v2418_v50 = vpop.xlane.xlu1 %2417 }
0x12dd   : > { %v2422_v51 = vmul.f32 0.03125, %v2418_v50 }
0x12df   : > { %v2424_v52 = vadd.f32 1e-05, %v2422_v51 }
0x12e0   : > { %v2421_v54 = vpop.xlane.xlu1 %2420 }
0x12e1   : > { %3366 = vrsqrt.f32 %v2424_v52  ;;  %v2423_v55 = vmul.f32 0.03125, %v2421_v54 }
0x12e3   : > { %v2425_v56 = vadd.f32 1e-05, %v2423_v55 }
0x12e5   : > { %3368 = vrsqrt.f32 %v2425_v56 }
0x12eb   : > { %v3367_v58 = vpop.eup %3366 }
0x12ec   : > { %v2428_v60 = vmul.f32 %v3367_v58, %v2412_v46 }
0x12ee   : > { %v2436_v62 = vmul.f32 %v2875_v59, %v2428_v60 }
0x12ef   : > { %v3369_v63 = vpop.eup %3368 }
0x12f0   : > { %v2444_v0 = vadd.f32 %v2876_v61, %v2436_v62  ;;  %v2429_v1 = vmul.f32 %v3369_v63, %v2413_v48 }
0x12f2   : > { %2446 = vst.msk [vmem:[%s4730_s20] sm:$0xff] %vm951_vm1, %v2444_v0  ;;  %v2437_v2 = vmul.f32 %v2875_v59, %v2429_v1 }
0x12f4   : > { %v2445_v18 = vadd.f32 %v2876_v61, %v2437_v2 }
0x12f6   : > { %2447 = vst.msk [vmem:[%s4730_s20 + $0x8] sm:$0xff] %vm951_vm1, %v2445_v18 }
0x12f7 PF: > { %s5197_s24 = sld [smem:[#allocation35_spill]] }
0x12fd   : > { %p2877_p3 = scmp.ge.s32.totalorder %s5197_s24, 1 }
0x12fe   : > { %2452 = vst.msk [vmem:[%s4730_s20] sm:$0xff] (!%p2877_p3), %vm951_vm1, %v2396_v35  ;;  %2453 = vst.msk [vmem:[%s4730_s20 + $0x8] sm:$0xff] (!%p2877_p3), %vm951_vm1, %v2397_v38 }
0x12ff   : > { %2451 = sbr.rel (%p2877_p3) target bundleno = 4870 (0x1306), region = 152 }
0x1306 PF: > { %s5198_s13 = sld [smem:[#allocation36_spill]]  ;;  %s5200_s6 = sld [smem:[#allocation57_spill]] }
0x1307   : > { %s2468_s12 = sshll.u32 %s4730_s20, 4  ;;  %s4999_s25 = scalar_lea.sflag [#allocation6], %s731_s8  ;;  %s4995_s12 = int_to_ptr.vmem [resolvable:$true] %s2468_s12 }
0x1308   : > { %s3814_s0 = scalar_lea.vmem %s4995_s12, 256  ;;  %p5201_p1 = scmp.ne.s32.totalorder %s5168_s18, 0 }
0x1309   : > { %p3815_p5 = scmp.ne.s32.totalorder %s4995_s12, %s3814_s0  ;;  %s3985_s27 = smov [#allocation23]  }
0x130a   : > { %s3818_s7 = sshll.u32 %s3985_s27, 4  ;;  %s3819_s7 = int_to_ptr.vmem [resolvable:$false] %s3818_s7 }
0x130b   : > { %p3816_p11 = pnand %p3815_p5, %p5201_p1  ;;  %s3820_s17 = scalar_lea.vmem %s3819_s7, 512 }
0x130c   : > { %s2894_s15 = sshll.u32 %s5198_s13, 8  ;;  %p3821_p13 = scmp.lt.s32.totalorder %s4995_s12, %s3819_s7 }
0x130d   : > { %s4992_s30 = scalar_lea.hbm %s5200_s6, %s2894_s15  ;;  %p3817_p8 = pneg %p3816_p11 }
0x130e   : > { %p3822_p12 = scmp.lt.s32.totalorder %s3820_s17, %s3814_s0 }
0x1310   : > { %p3823_p2 = por %p3822_p12, %p3821_p13 }
0x1312   : > { %p3824_p4 = pnand %p3823_p2, %p3817_p8 }
0x1314   : > { %3827 = shalt.err (!%p3824_p4)
}
0x1315   : > { %s3828_s8 = scalar_lea.hbm %s4992_s30, 256  ;;  %s3832_s16 = scalar_lea.hbm %s5200_s6, 512 }
0x1316   : > { %p3829_p9 = scmp.ne.s32.totalorder %s4992_s30, %s3828_s8  ;;  %p3833_p0 = scmp.lt.u32.totalorder %s4992_s30, %s5200_s6 }
0x1317   : > { %p3834_p7 = scmp.lt.u32.totalorder %s3832_s16, %s3828_s8  ;;  %p3836_p5 = scmp.lt.u32.totalorder %s3828_s8, %s4992_s30 }
0x1318   : > { %p3830_p6 = pnand %p3829_p9, %p5201_p1 }
0x1319   : > { %p3835_p3 = por %p3834_p7, %p3833_p0 }
0x131a   : > { %p3831_p10 = pneg %p3830_p6 }
0x131b   : > { %p3837_p11 = por %p3836_p5, %p3835_p3 }
0x131d   : > { %p3838_p8 = pnand %p3837_p11, %p3831_p10 }
0x131f   : > { %3841 = shalt.err (!%p3838_p8)
}
0x1320   : > { %s3986_s11 = smov 128  }
0x1321   : > { %3133 = dma.vmem_to_hbm [thread:$0]  (%p5201_p1), %s4995_s12, 256, %s4992_s30, %s4999_s25, %s3986_s11, %s3986_s11, %s3982_s14  }
0x1322 PF: > { %p3193_p13 = scmp.ge.s32.totalorder %s3952_s28, 2  ;;  %s2483_s3 = sand.u32 1, %s3924_s21  }
0x1323   : > { %p5202_p12 = scmp.ne.s32.totalorder %s5169_s22, 0  ;;  %s2484_s24 = scalar_lea.sflag [#allocation6], %s2483_s3 }
0x1325   : > { %p3183_p2 = pnand %p3193_p13, %p5202_p12 }
0x1327   : > { %3907 = dma.done.wait (!%p3183_p2), %s2484_s24, 256  }
0x1328   : > { %3909 = vsyncadd (!%p3183_p2), %s2484_s24, 4294967040  ;;  %s33_s28 = sadd.s32 1, %s3952_s28   ;;  %s5203_s18 = sld [smem:[#allocation31_spill]] }
0x1329   : > { %p30_p4 = scmp.ge.s32.totalorder %s33_s28, 6   ;;  %s5204_s19 = sld [smem:[#allocation32_spill]] }
0x132a   : > { %s5205_s20 = sld [smem:[#allocation40_spill]]  ;;  %s5206_s21 = sld [smem:[#allocation33_spill]] }
0x132b   : > { %s5207_s22 = sld [smem:[#allocation34_spill]]  ;;  %s5208_s23 = sld [smem:[#allocation41_spill]] }
0x132c   : > { %s5209_s25 = sld [smem:[#allocation37_spill]]  ;;  %s5210_s14 = sld [smem:[#allocation38_spill]] }
0x132d   : > { %s5211_s27 = sld [smem:[#allocation39_spill]]  ;;  %s5212_s24 = smov %s3944_s26 }
0x132e   :  { %32 = sbr.rel (!%p30_p4) target bundleno = 28 (0x1c), region = 270 }
0x1332   : > { %s5213_s26 = smov %s5210_s14 }
0x1335   :  { %2489 = vsyncpa [#allocation5], 1 }
0x1336   :  { %2491 = vsyncpa [#allocation5 + $0x1], 1 }
0x1337   :  { %2492 = vsyncpa [#allocation8], 1 }
0x1338   :  { %2493 = vsyncpa [#allocation22], 1 }
0x1339   :  { %2494 = vsyncpa [#allocation6], 1 }
0x133a   :  { %2496 = vsyncpa [#allocation6 + $0x1], 1 }

</bundles_post_ra>
